<compile_context>
chip_gen: v6e
topology: v6e:2x2x1
jax: 0.10.0
libtpu: 0.0.40
codegen_flags: <defaults>
</compile_context>

<pallas_src>
import functools

import jax
import jax.numpy as jnp
from jax import lax
from jax.experimental import pallas as pl
from jax.experimental.pallas import tpu as pltpu

_NEG_INF = -1e30


def refill_loss_kernel(xsa_ref, z_ref, y_ref, etgt_ref,
                       keyin_ref, keybias_ref, selmask_ref,
                       wdynT_ref, wemitT_ref, bemit_ref, embedT_ref,
                       out_ref,
                       lhs_s, sel_s, m_s, s_s,
                       *, k_real, v_real, l_total, mask_v):
    v = pl.program_id(2)
    nv = pl.num_programs(2)
    tl_ = xsa_ref.shape[1]
    kp = y_ref.shape[1]

    # ---- once per (batch, L-tile): V-invariant work + accumulator reset ----
    @pl.when(v == 0)
    def _init():
        xsa = xsa_ref[0]                                             # (TL, E)
        # emittor(xsa)
        emit = (jnp.dot(xsa, wemitT_ref[...],
                        preferred_element_type=jnp.float32) + bemit_ref[...])
        # fused vocab-matmul LHS: [emit ; z ; y_pad]  (all sublane-aligned)
        lhs_s[0:tl_, :] = emit.astype(lhs_s.dtype)
        lhs_s[tl_:2 * tl_, :] = z_ref[0]
        lhs_s[2 * tl_:2 * tl_ + kp, :] = y_ref[0]
        # selection keys in ONE matmul: rows 0..1 of keyin are zero and the
        # bias carries xkey_static.weight; rows 2..2+K carry y and the bias
        # carries b_dyn -> no sublane concat of (2,E) with (K,E).
        keys = (jnp.dot(keyin_ref[0], wdynT_ref[...],
                        preferred_element_type=jnp.float32)
                + keybias_ref[...]).astype(xsa.dtype)                # (Cp, E)
        sel_logits = lax.dot_general(
            xsa, keys, (((1,), (1,)), ((), ())),
            preferred_element_type=jnp.float32)                      # (TL, Cp)
        sel_logits = sel_logits + selmask_ref[...]                   # mask pad
        m = jnp.max(sel_logits, axis=-1, keepdims=True)
        e = sel_logits - m
        sel_s[...] = e - jnp.log(jnp.sum(jnp.exp(e), axis=-1, keepdims=True))
        # reset the streaming logsumexp accumulators for the whole slab
        m_s[...] = jnp.full_like(m_s, _NEG_INF)
        s_s[...] = jnp.zeros_like(s_s)

    # ---- every V tile: one fused matmul + one online logsumexp update ----
    etile = embedT_ref[...]                                          # (E, TV)
    logits = jnp.dot(lhs_s[...], etile,
                     preferred_element_type=jnp.float32)             # (R, TV)
    if mask_v:
        col = lax.broadcasted_iota(jnp.int32, logits.shape, 1) + v * etile.shape[1]
        logits = jnp.where(col < v_real, logits, _NEG_INF)
    m_tile = jnp.max(logits, axis=-1, keepdims=True)
    m_new = jnp.maximum(m_s[...], m_tile)
    s_s[...] = (s_s[...] * jnp.exp(m_s[...] - m_new)
                + jnp.sum(jnp.exp(logits - m_new), axis=-1, keepdims=True))
    m_s[...] = m_new

    # ---- last V tile: combine the 2+K candidates in log space ----
    @pl.when(v == nv - 1)
    def _finalize():
        sel_lp = sel_s[...]                                          # (TL, Cp)
        logz = m_s[...] + jnp.log(s_s[...])                          # (R, 1)
        etgt = etgt_ref[0]                                           # (TL, E)
        etgt_f = etgt.astype(jnp.float32)
        # target logits: two elementwise row-sums + one tiny trans_b matmul
        t_e = jnp.sum(lhs_s[0:tl_, :].astype(jnp.float32) * etgt_f,
                      axis=-1, keepdims=True)                        # (TL, 1)
        t_z = jnp.sum(lhs_s[tl_:2 * tl_, :].astype(jnp.float32) * etgt_f,
                      axis=-1, keepdims=True)                        # (TL, 1)
        t_y = lax.dot_general(etgt, y_ref[0], (((1,), (1,)), ((), ())),
                              preferred_element_type=jnp.float32)    # (TL, Kp)
        log_pe = t_e - logz[0:tl_, :]
        log_pz = t_z - logz[tl_:2 * tl_, :]
        lz_y = logz[2 * tl_:2 * tl_ + kp, :]                         # (Kp, 1)
        # Broadcast the Kp per-key normalizers across the TL rows with a tiny
        # 128-wide outer matmul (avoids an awkward (K,1)->(1,K) relayout and
        # is ~TV/128x smaller than the previous full-width broadcast trick).
        lz_row = lax.dot_general(
            jnp.full((tl_, 128), 1.0 / 128.0, jnp.float32),
            jnp.broadcast_to(lz_y, (kp, 128)),
            (((1,), (1,)), ((), ())),
            preferred_element_type=jnp.float32)                      # (TL, Kp)
        a_e = sel_lp[:, 0:1] + log_pe
        a_z = sel_lp[:, 1:2] + log_pz
        a_y = sel_lp[:, 2:2 + k_real] + t_y[:, :k_real] - lz_row[:, :k_real]
        m_all = jnp.maximum(jnp.maximum(a_e, a_z),
                            jnp.max(a_y, axis=-1, keepdims=True))
        mix = (jnp.exp(a_e - m_all) + jnp.exp(a_z - m_all)
               + jnp.sum(jnp.exp(a_y - m_all), axis=-1, keepdims=True))
        logmix = m_all + jnp.log(mix)                                # (TL, 1)
        # TODO(synk): matching the original module, every position counts and
        # the loss divides by the full L (no padding/validity mask).
        tile_sum = jnp.sum(logmix, axis=0, keepdims=True)            # (1, 1)
        out_ref[...] = jnp.zeros(out_ref.shape, jnp.float32) - tile_sum / l_total


def _round_up(x, m):
    return ((x + m - 1) // m) * m


def _pick_tile(full, prefs):
    for p in prefs:
        if p <= full and full % p == 0:
            return p
    return full


def refill_loss(xsa, z, y, tok, params, *,
                compute_dtype=jnp.float32, tl=None, tv=None,
                vmem_limit_bytes=48 * 1024 * 1024):
    B, L, E = xsa.shape
    K = y.shape[1]
    V = params["embed"].shape[0]
    C = 2 + K

    # ---- tiling --------------------------------------------------------
    # L-tile: arithmetic intensity of the vocab stream is ~2*TL FLOP/byte, so
    # v6e/v7x want TL up to 512 to clear the HBM roofline; v5e is compute
    # bound already at 128-256.  (On v7x re-check the 64 MiB/TC VMEM budget:
    # 2*E*tv embed buffers + 4*E*E weights + 2*2*tl*E activations + lhs scratch.)
    tl = tl or _pick_tile(L, (512, 256, 128, 64, 32, 16, 8))
    assert L % tl == 0 and tl % 8 == 0, "L must tile into multiples of 8"
    nl = L // tl
    # V-tile: V is padded to a multiple of tv and padded columns are masked to
    # -inf in-kernel, so real vocab sizes (e.g. 50257) keep a pipelined stream.
    if tv is None:
        tv = 512 if V >= 512 else _round_up(V, 128)
    assert tv % 128 == 0
    v_pad = _round_up(V, tv)
    nv = v_pad // tv
    mask_v = v_pad != V

    k_pad = _round_up(max(K, 8), 8)
    c_pad = _round_up(max(C, 8), 8)

    cd = compute_dtype
    xsa_c = xsa.astype(cd)
    z_c = z.astype(cd)
    y_p = jnp.zeros((B, k_pad, E), cd).at[:, :K, :].set(y.astype(cd))

    # Target-token embeddings gathered once here (plain XLA gather); the kernel
    # never builds a one-hot or touches (L, V)-sized target data.
    # TODO(synk): the original forward's target arg `x` is undefined in the
    # source; it is passed explicitly as integer ids `tok` of shape [B, L].
    tok_c = jnp.clip(tok.astype(jnp.int32), 0, V - 1)
    etgt = jnp.take(params["embed"], tok_c, axis=0).astype(cd)       # (B, L, E)

    # Packed inputs for the single selection-key matmul (no sublane concat).
    key_in = jnp.zeros((B, c_pad, E), cd).at[:, 2:2 + K, :].set(y.astype(cd))
    key_bias = (jnp.zeros((c_pad, E), jnp.float32)
                .at[0:2, :].set(params["w_static"].astype(jnp.float32))
                .at[2:2 + K, :].set(params["b_dyn"].astype(jnp.float32)[None, :]))
    sel_mask = jnp.where(jnp.arange(c_pad) < C, 0.0, _NEG_INF
                         ).astype(jnp.float32)[None, :]              # (1, Cp)

    wdynT = params["w_dyn"].T.astype(cd)                             # (E, E)
    wemitT = params["w_emit"].T.astype(cd)                           # (E, E)
    bemit = params["b_emit"].reshape(1, E).astype(jnp.float32)
    embedT = jnp.zeros((E, v_pad), cd).at[:, :V].set(params["embed"].T.astype(cd))

    kernel = functools.partial(refill_loss_kernel, k_real=K, v_real=V,
                               l_total=L, mask_v=mask_v)
    rows = 2 * tl + k_pad

    # (Weight inputs with constant index maps could use
    #  pipeline_mode=pl.Buffered(1) to reclaim VMEM on v7x; left at the default
    #  double buffering here for maximum compile-compatibility.)
    out = pl.pallas_call(
        kernel,
        out_shape=jax.ShapeDtypeStruct((B, nl, 8, 128), jnp.float32),
        grid_spec=pltpu.PrefetchScalarGridSpec(
            num_scalar_prefetch=0,
            grid=(B, nl, nv),
            in_specs=[
                pl.BlockSpec((1, tl, E), lambda b, lt, v: (b, lt, 0)),     # xsa
                pl.BlockSpec((1, tl, E), lambda b, lt, v: (b, lt, 0)),     # z
                pl.BlockSpec((1, k_pad, E), lambda b, lt, v: (b, 0, 0)),   # y (padded)
                pl.BlockSpec((1, tl, E), lambda b, lt, v: (b, lt, 0)),     # embed[tok]
                pl.BlockSpec((1, c_pad, E), lambda b, lt, v: (b, 0, 0)),   # key_in
                pl.BlockSpec((c_pad, E), lambda b, lt, v: (0, 0)),         # key_bias
                pl.BlockSpec((1, c_pad), lambda b, lt, v: (0, 0)),         # sel pad mask
                pl.BlockSpec((E, E), lambda b, lt, v: (0, 0)),             # xkey_dynamic.weight^T
                pl.BlockSpec((E, E), lambda b, lt, v: (0, 0)),             # emittor.weight^T
                pl.BlockSpec((1, E), lambda b, lt, v: (0, 0)),             # emittor.bias
                pl.BlockSpec((E, tv), lambda b, lt, v: (0, v)),            # embed.weight^T (V-tiled)
            ],
            out_specs=pl.BlockSpec((1, 1, 8, 128), lambda b, lt, v: (b, lt, 0, 0)),
            scratch_shapes=[
                pltpu.VMEM((rows, E), cd),          # fused LHS [emit ; z ; y]
                pltpu.VMEM((tl, c_pad), jnp.float32),   # selection log-probs
                pltpu.VMEM((rows, 1), jnp.float32),     # streaming max
                pltpu.VMEM((rows, 1), jnp.float32),     # streaming sum-exp
            ],
        ),
        compiler_params=pltpu.CompilerParams(
            dimension_semantics=("parallel", "parallel", "arbitrary"),
            vmem_limit_bytes=vmem_limit_bytes,
        ),
    )(xsa_c, z_c, y_p, etgt, key_in, key_bias, sel_mask,
      wdynT, wemitT, bemit, embedT)

    # partial per-(batch, L-tile) losses in a lane-dense block; reduce here.
    return out[:, :, 0, 0].sum(axis=1)


def refill_loss_ref(xsa, z, y, tok, params):
    """Pure-JAX mirror of the PyTorch forward (use_mixture=1)."""
    B, L, E = xsa.shape
    K = y.shape[1]
    embed = params["embed"]                                            # (V, E)
    xkey_static = jnp.broadcast_to(params["w_static"][None], (B, 2, E))
    xkey_dynamic = y @ params["w_dyn"].T + params["b_dyn"]
    xkey = jnp.concatenate([xkey_static, xkey_dynamic], axis=1)        # (B, C, E)
    emit = xsa @ params["w_emit"].T + params["b_emit"]
    cand = jnp.concatenate(
        [emit[:, :, None], z[:, :, None],
         jnp.broadcast_to(y[:, None], (B, L, K, E))], axis=2)          # (B, L, C, E)
    sel = jax.nn.log_softmax(jnp.einsum("ble,bce->blc", xsa, xkey), axis=-1)
    lptok = jax.nn.log_softmax(cand @ embed.T, axis=-1)                # (B, L, C, V)
    lptok = jax.nn.logsumexp(sel[..., None] + lptok, axis=-2)          # (B, L, V)
    yp = jnp.take_along_axis(lptok, tok[:, :, None], axis=-1)[..., 0]
    return -yp.mean(-1)


if __name__ == "__main__":
    B, L, K, E, V = 2, 8, 6, 32, 64
    key = jax.random.PRNGKey(0)
    ks = jax.random.split(key, 10)

    xsa = jax.random.normal(ks[0], (B, L, E), jnp.float32)
    z = jax.random.normal(ks[1], (B, L, E), jnp.float32)
    y = jax.random.normal(ks[2], (B, K, E), jnp.float32)
    tok = jax.random.randint(ks[3], (B, L), 0, V, dtype=jnp.int32)

    params = {
        "embed":    jax.random.normal(ks[4], (V, E), jnp.float32) * 0.1,
        "w_static": jax.random.normal(ks[5], (2, E), jnp.float32) * 0.1,
        "w_dyn":    jax.random.normal(ks[6], (E, E), jnp.float32) * 0.1,
        "b_dyn":    jax.random.normal(ks[7], (E,), jnp.float32) * 0.1,
        "w_emit":   jax.random.normal(ks[8], (E, E), jnp.float32) * 0.1,
        "b_emit":   jax.random.normal(ks[9], (E,), jnp.float32) * 0.1,
    }

    loss_ref = refill_loss_ref(xsa, z, y, tok, params)

    # f32 path.  Tolerance accounts for the kernel computing target logits in
    # full f32 while the XLA reference matmuls use the backend default precision.
    loss = jax.block_until_ready(refill_loss(xsa, z, y, tok, params))
    assert loss.shape == (B,)
    assert jnp.allclose(loss, loss_ref, atol=2e-3, rtol=2e-3), (loss, loss_ref)

    # bf16 MXU path (production default on v6e/v7x): bf16 matmul inputs,
    # f32 accumulation + softmax/exp/log math.
    loss_bf16 = jax.block_until_ready(
        refill_loss(xsa, z, y, tok, params, compute_dtype=jnp.bfloat16))
    assert jnp.allclose(loss_bf16, loss_ref, atol=5e-2, rtol=5e-2), (loss_bf16, loss_ref)

    # Multi-tile path: 2 L-tiles, 3 streamed V tiles with a padded vocab (300->384).
    B2, L2, V2 = 2, 16, 300
    ks2 = jax.random.split(jax.random.PRNGKey(1), 5)
    xsa2 = jax.random.normal(ks2[0], (B2, L2, E), jnp.float32)
    z2 = jax.random.normal(ks2[1], (B2, L2, E), jnp.float32)
    y2 = jax.random.normal(ks2[2], (B2, K, E), jnp.float32)
    tok2 = jax.random.randint(ks2[3], (B2, L2), 0, V2, dtype=jnp.int32)
    params2 = dict(params)
    params2["embed"] = jax.random.normal(ks2[4], (V2, E), jnp.float32) * 0.1
    loss2 = jax.block_until_ready(
        refill_loss(xsa2, z2, y2, tok2, params2, tl=8, tv=128))
    loss2_ref = refill_loss_ref(xsa2, z2, y2, tok2, params2)
    assert jnp.allclose(loss2, loss2_ref, atol=2e-3, rtol=2e-3), (loss2, loss2_ref)

    print("KERNEL_OK")
</pallas_src>

<mosaic_0001>
module attributes {stable_mosaic.version = 11 : i64} {
  func.func @refill_loss_kernel(%arg0: i32, %arg1: i32, %arg2: i32, %arg3: memref<1x8x32xf32, #tpu.memory_space<vmem>>, %arg4: memref<1x8x32xf32, #tpu.memory_space<vmem>>, %arg5: memref<1x8x32xf32, #tpu.memory_space<vmem>>, %arg6: memref<1x8x32xf32, #tpu.memory_space<vmem>>, %arg7: memref<1x8x32xf32, #tpu.memory_space<vmem>>, %arg8: memref<8x32xf32, #tpu.memory_space<vmem>>, %arg9: memref<1x8xf32, #tpu.memory_space<vmem>>, %arg10: memref<32x32xf32, #tpu.memory_space<vmem>>, %arg11: memref<32x32xf32, #tpu.memory_space<vmem>>, %arg12: memref<1x32xf32, #tpu.memory_space<vmem>>, %arg13: memref<32x128xf32, #tpu.memory_space<vmem>>, %arg14: memref<1x1x8x128xf32, #tpu.memory_space<vmem>>, %arg15: memref<24x32xf32, #tpu.memory_space<vmem>>, %arg16: memref<8x8xf32, #tpu.memory_space<vmem>>, %arg17: memref<24x1xf32, #tpu.memory_space<vmem>>, %arg18: memref<24x1xf32, #tpu.memory_space<vmem>>) attributes {dimension_semantics = [#tpu.dimension_semantics<parallel>, #tpu.dimension_semantics<parallel>, #tpu.dimension_semantics<arbitrary>], iteration_bounds = array<i64: 2, 1, 1>, scalar_prefetch = 0 : i64, scratch_operands = 4 : i64, tpu.core_type = #tpu.core_type<tc>, window_params = [{transform_indices = @transform_0, window_bounds = array<i64: 1, 8, 32>}, {transform_indices = @transform_1, window_bounds = array<i64: 1, 8, 32>}, {transform_indices = @transform_2, window_bounds = array<i64: 1, 8, 32>}, {transform_indices = @transform_3, window_bounds = array<i64: 1, 8, 32>}, {transform_indices = @transform_4, window_bounds = array<i64: 1, 8, 32>}, {pipeline_mode = #tpu.pipeline_mode<synchronous>, transform_indices = @transform_5, window_bounds = array<i64: 8, 32>}, {pipeline_mode = #tpu.pipeline_mode<synchronous>, transform_indices = @transform_6, window_bounds = array<i64: 1, 8>}, {pipeline_mode = #tpu.pipeline_mode<synchronous>, transform_indices = @transform_7, window_bounds = array<i64: 32, 32>}, {pipeline_mode = #tpu.pipeline_mode<synchronous>, transform_indices = @transform_8, window_bounds = array<i64: 32, 32>}, {pipeline_mode = #tpu.pipeline_mode<synchronous>, transform_indices = @transform_9, window_bounds = array<i64: 1, 32>}, {transform_indices = @transform_10, window_bounds = array<i64: 32, 128>}, {transform_indices = @transform_11, window_bounds = array<i64: 1, 1, 8, 128>}]} {
    %c0_i32 = arith.constant 0 : i32
    %0 = arith.cmpi eq, %arg2, %c0_i32 : i32
    %1 = arith.extui %0 : i1 to i32
    %c0_i32_0 = arith.constant 0 : i32
    %2 = arith.cmpi ne, %1, %c0_i32_0 : i32
    scf.if %2 {
      %c0_19 = arith.constant 0 : index
      %c0_20 = arith.constant 0 : index
      %c0_21 = arith.constant 0 : index
      %34 = vector.load %arg3[%c0_19, %c0_20, %c0_21] : memref<1x8x32xf32, #tpu.memory_space<vmem>>, vector<1x8x32xf32>
      %35 = vector.shape_cast %34 : vector<1x8x32xf32> to vector<8x32xf32>
      %c0_22 = arith.constant 0 : index
      %c0_23 = arith.constant 0 : index
      %36 = vector.load %arg11[%c0_22, %c0_23] : memref<32x32xf32, #tpu.memory_space<vmem>>, vector<32x32xf32>
      %cst_24 = arith.constant dense<0.000000e+00> : vector<8x32xf32>
      %37 = tpu.matmul %35, %36, %cst_24 {dimension_numbers = #tpu.dot_dimension_numbers<[1], [0], [0], [1], [0, 0, 1, 1], [], []>} : vector<8x32xf32>, vector<32x32xf32>, vector<8x32xf32> -> vector<8x32xf32>
      %c0_25 = arith.constant 0 : index
      %c0_26 = arith.constant 0 : index
      %38 = vector.load %arg12[%c0_25, %c0_26] : memref<1x32xf32, #tpu.memory_space<vmem>>, vector<1x32xf32>
      %39 = vector.broadcast %38 : vector<1x32xf32> to vector<8x32xf32>
      %40 = arith.addf %37, %39 : vector<8x32xf32>
      %c0_27 = arith.constant 0 : index
      %c0_28 = arith.constant 0 : index
      %41 = vector.load %arg15[%c0_27, %c0_28] : memref<24x32xf32, #tpu.memory_space<vmem>>, vector<8x32xf32>
      tpu.vector_store %arg15[%c0_27, %c0_28], %40 {strides = array<i32>} : memref<24x32xf32, #tpu.memory_space<vmem>>, vector<8x32xf32>,
      %c0_29 = arith.constant 0 : index
      %c0_30 = arith.constant 0 : index
      %c0_31 = arith.constant 0 : index
      %42 = vector.load %arg4[%c0_29, %c0_30, %c0_31] : memref<1x8x32xf32, #tpu.memory_space<vmem>>, vector<1x8x32xf32>
      %43 = vector.shape_cast %42 : vector<1x8x32xf32> to vector<8x32xf32>
      %c8 = arith.constant 8 : index
      %c0_32 = arith.constant 0 : index
      %44 = vector.load %arg15[%c8, %c0_32] : memref<24x32xf32, #tpu.memory_space<vmem>>, vector<8x32xf32>
      tpu.vector_store %arg15[%c8, %c0_32], %43 {strides = array<i32>} : memref<24x32xf32, #tpu.memory_space<vmem>>, vector<8x32xf32>,
      %c0_33 = arith.constant 0 : index
      %c0_34 = arith.constant 0 : index
      %c0_35 = arith.constant 0 : index
      %45 = vector.load %arg5[%c0_33, %c0_34, %c0_35] : memref<1x8x32xf32, #tpu.memory_space<vmem>>, vector<1x8x32xf32>
      %46 = vector.shape_cast %45 : vector<1x8x32xf32> to vector<8x32xf32>
      %c16 = arith.constant 16 : index
      %c0_36 = arith.constant 0 : index
      %47 = vector.load %arg15[%c16, %c0_36] : memref<24x32xf32, #tpu.memory_space<vmem>>, vector<8x32xf32>
      tpu.vector_store %arg15[%c16, %c0_36], %46 {strides = array<i32>} : memref<24x32xf32, #tpu.memory_space<vmem>>, vector<8x32xf32>,
      %c0_37 = arith.constant 0 : index
      %c0_38 = arith.constant 0 : index
      %c0_39 = arith.constant 0 : index
      %48 = vector.load %arg7[%c0_37, %c0_38, %c0_39] : memref<1x8x32xf32, #tpu.memory_space<vmem>>, vector<1x8x32xf32>
      %49 = vector.shape_cast %48 : vector<1x8x32xf32> to vector<8x32xf32>
      %c0_40 = arith.constant 0 : index
      %c0_41 = arith.constant 0 : index
      %50 = vector.load %arg10[%c0_40, %c0_41] : memref<32x32xf32, #tpu.memory_space<vmem>>, vector<32x32xf32>
      %cst_42 = arith.constant dense<0.000000e+00> : vector<8x32xf32>
      %51 = tpu.matmul %49, %50, %cst_42 {dimension_numbers = #tpu.dot_dimension_numbers<[1], [0], [0], [1], [0, 0, 1, 1], [], []>} : vector<8x32xf32>, vector<32x32xf32>, vector<8x32xf32> -> vector<8x32xf32>
      %c0_43 = arith.constant 0 : index
      %c0_44 = arith.constant 0 : index
      %52 = vector.load %arg8[%c0_43, %c0_44] : memref<8x32xf32, #tpu.memory_space<vmem>>, vector<8x32xf32>
      %53 = arith.addf %51, %52 : vector<8x32xf32>
      %cst_45 = arith.constant dense<0.000000e+00> : vector<8x8xf32>
      %54 = tpu.matmul %35, %53, %cst_45 {dimension_numbers = #tpu.dot_dimension_numbers<[1], [1], [0], [0], [0, 0, 1, 0], [], []>} : vector<8x32xf32>, vector<8x32xf32>, vector<8x8xf32> -> vector<8x8xf32>
      %c0_46 = arith.constant 0 : index
      %c0_47 = arith.constant 0 : index
      %55 = vector.load %arg9[%c0_46, %c0_47] : memref<1x8xf32, #tpu.memory_space<vmem>>, vector<1x8xf32>
      %56 = vector.broadcast %55 : vector<1x8xf32> to vector<8x8xf32>
      %57 = arith.addf %54, %56 : vector<8x8xf32>
      %cst_48 = arith.constant dense<0xFF800000> : vector<8xf32>
      %58 = vector.multi_reduction <maximumf>, %57, %cst_48 [1] : vector<8x8xf32> to vector<8xf32>
      %59 = vector.shape_cast %58 : vector<8xf32> to vector<8x1xf32>
      %60 = vector.broadcast %59 : vector<8x1xf32> to vector<8x8xf32>
      %61 = arith.subf %57, %60 : vector<8x8xf32>
      %62 = math.exp %61 : vector<8x8xf32>
      %cst_49 = arith.constant dense<0.000000e+00> : vector<8xf32>
      %63 = vector.multi_reduction <add>, %62, %cst_49 [1] : vector<8x8xf32> to vector<8xf32>
      %64 = vector.shape_cast %63 : vector<8xf32> to vector<8x1xf32>
      %65 = math.log %64 : vector<8x1xf32>
      %66 = vector.broadcast %65 : vector<8x1xf32> to vector<8x8xf32>
      %67 = arith.subf %61, %66 : vector<8x8xf32>
      %c0_50 = arith.constant 0 : index
      %c0_51 = arith.constant 0 : index
      %68 = vector.load %arg16[%c0_50, %c0_51] : memref<8x8xf32, #tpu.memory_space<vmem>>, vector<8x8xf32>
      tpu.vector_store %arg16[%c0_50, %c0_51], %67 {strides = array<i32>} : memref<8x8xf32, #tpu.memory_space<vmem>>, vector<8x8xf32>,
      %cst_52 = arith.constant -1.000000e+30 : f32
      %69 = vector.broadcast %cst_52 : f32 to vector<24x1xf32>
      %c0_53 = arith.constant 0 : index
      %c0_54 = arith.constant 0 : index
      %70 = vector.load %arg17[%c0_53, %c0_54] : memref<24x1xf32, #tpu.memory_space<vmem>>, vector<24x1xf32>
      tpu.vector_store %arg17[%c0_53, %c0_54], %69 {strides = array<i32>} : memref<24x1xf32, #tpu.memory_space<vmem>>, vector<24x1xf32>,
      %cst_55 = arith.constant 0.000000e+00 : f32
      %71 = vector.broadcast %cst_55 : f32 to vector<24x1xf32>
      %c0_56 = arith.constant 0 : index
      %c0_57 = arith.constant 0 : index
      %72 = vector.load %arg18[%c0_56, %c0_57] : memref<24x1xf32, #tpu.memory_space<vmem>>, vector<24x1xf32>
      tpu.vector_store %arg18[%c0_56, %c0_57], %71 {strides = array<i32>} : memref<24x1xf32, #tpu.memory_space<vmem>>, vector<24x1xf32>,
    } else {
    }
    %c0 = arith.constant 0 : index
    %c0_1 = arith.constant 0 : index
    %3 = vector.load %arg13[%c0, %c0_1] : memref<32x128xf32, #tpu.memory_space<vmem>>, vector<32x128xf32>
    %c0_2 = arith.constant 0 : index
    %c0_3 = arith.constant 0 : index
    %4 = vector.load %arg15[%c0_2, %c0_3] : memref<24x32xf32, #tpu.memory_space<vmem>>, vector<24x32xf32>
    %cst = arith.constant dense<0.000000e+00> : vector<24x128xf32>
    %5 = tpu.matmul %4, %3, %cst {dimension_numbers = #tpu.dot_dimension_numbers<[1], [0], [0], [1], [0, 0, 1, 1], [], []>} : vector<24x32xf32>, vector<32x128xf32>, vector<24x128xf32> -> vector<24x128xf32>
    %6 = tpu.iota {dimensions = array<i32: 1>} : vector<24x128xi32>
    %c128_i32 = arith.constant 128 : i32
    %7 = arith.muli %arg2, %c128_i32 : i32
    %8 = vector.broadcast %7 : i32 to vector<24x128xi32>
    %9 = arith.addi %6, %8 : vector<24x128xi32>
    %c64_i32 = arith.constant 64 : i32
    %10 = vector.broadcast %c64_i32 : i32 to vector<24x128xi32>
    %11 = arith.cmpi slt, %9, %10 : vector<24x128xi32>
    %cst_4 = arith.constant -1.000000e+30 : f32
    %12 = vector.broadcast %cst_4 : f32 to vector<24x128xf32>
    %13 = arith.select %11, %5, %12 : vector<24x128xi1>, vector<24x128xf32>
    %cst_5 = arith.constant dense<0xFF800000> : vector<24xf32>
    %14 = vector.multi_reduction <maximumf>, %13, %cst_5 [1] : vector<24x128xf32> to vector<24xf32>
    %15 = vector.shape_cast %14 : vector<24xf32> to vector<24x1xf32>
    %c0_6 = arith.constant 0 : index
    %c0_7 = arith.constant 0 : index
    %16 = vector.load %arg17[%c0_6, %c0_7] : memref<24x1xf32, #tpu.memory_space<vmem>>, vector<24x1xf32>
    %17 = arith.maximumf %16, %15 : vector<24x1xf32>
    %c0_8 = arith.constant 0 : index
    %c0_9 = arith.constant 0 : index
    %18 = vector.load %arg18[%c0_8, %c0_9] : memref<24x1xf32, #tpu.memory_space<vmem>>, vector<24x1xf32>
    %c0_10 = arith.constant 0 : index
    %c0_11 = arith.constant 0 : index
    %19 = vector.load %arg17[%c0_10, %c0_11] : memref<24x1xf32, #tpu.memory_space<vmem>>, vector<24x1xf32>
    %20 = arith.subf %19, %17 : vector<24x1xf32>
    %21 = math.exp %20 : vector<24x1xf32>
    %22 = arith.mulf %18, %21 : vector<24x1xf32>
    %23 = vector.broadcast %17 : vector<24x1xf32> to vector<24x128xf32>
    %24 = arith.subf %13, %23 : vector<24x128xf32>
    %25 = math.exp %24 : vector<24x128xf32>
    %cst_12 = arith.constant dense<0.000000e+00> : vector<24xf32>
    %26 = vector.multi_reduction <add>, %25, %cst_12 [1] : vector<24x128xf32> to vector<24xf32>
    %27 = vector.shape_cast %26 : vector<24xf32> to vector<24x1xf32>
    %28 = arith.addf %22, %27 : vector<24x1xf32>
    %c0_13 = arith.constant 0 : index
    %c0_14 = arith.constant 0 : index
    %29 = vector.load %arg18[%c0_13, %c0_14] : memref<24x1xf32, #tpu.memory_space<vmem>>, vector<24x1xf32>
    tpu.vector_store %arg18[%c0_13, %c0_14], %28 {strides = array<i32>} : memref<24x1xf32, #tpu.memory_space<vmem>>, vector<24x1xf32>,
    %c0_15 = arith.constant 0 : index
    %c0_16 = arith.constant 0 : index
    %30 = vector.load %arg17[%c0_15, %c0_16] : memref<24x1xf32, #tpu.memory_space<vmem>>, vector<24x1xf32>
    tpu.vector_store %arg17[%c0_15, %c0_16], %17 {strides = array<i32>} : memref<24x1xf32, #tpu.memory_space<vmem>>, vector<24x1xf32>,
    %c0_i32_17 = arith.constant 0 : i32
    %31 = arith.cmpi eq, %arg2, %c0_i32_17 : i32
    %32 = arith.extui %31 : i1 to i32
    %c0_i32_18 = arith.constant 0 : i32
    %33 = arith.cmpi ne, %32, %c0_i32_18 : i32
    scf.if %33 {
      %c0_19 = arith.constant 0 : index
      %c0_20 = arith.constant 0 : index
      %34 = vector.load %arg16[%c0_19, %c0_20] : memref<8x8xf32, #tpu.memory_space<vmem>>, vector<8x8xf32>
      %c0_21 = arith.constant 0 : index
      %c0_22 = arith.constant 0 : index
      %35 = vector.load %arg17[%c0_21, %c0_22] : memref<24x1xf32, #tpu.memory_space<vmem>>, vector<24x1xf32>
      %c0_23 = arith.constant 0 : index
      %c0_24 = arith.constant 0 : index
      %36 = vector.load %arg18[%c0_23, %c0_24] : memref<24x1xf32, #tpu.memory_space<vmem>>, vector<24x1xf32>
      %37 = math.log %36 : vector<24x1xf32>
      %38 = arith.addf %35, %37 : vector<24x1xf32>
      %c0_25 = arith.constant 0 : index
      %c0_26 = arith.constant 0 : index
      %c0_27 = arith.constant 0 : index
      %39 = vector.load %arg6[%c0_25, %c0_26, %c0_27] : memref<1x8x32xf32, #tpu.memory_space<vmem>>, vector<1x8x32xf32>
      %40 = vector.shape_cast %39 : vector<1x8x32xf32> to vector<8x32xf32>
      %c0_28 = arith.constant 0 : index
      %c0_29 = arith.constant 0 : index
      %41 = vector.load %arg15[%c0_28, %c0_29] : memref<24x32xf32, #tpu.memory_space<vmem>>, vector<8x32xf32>
      %42 = arith.mulf %41, %40 : vector<8x32xf32>
      %cst_30 = arith.constant dense<0.000000e+00> : vector<8xf32>
      %43 = vector.multi_reduction <add>, %42, %cst_30 [1] : vector<8x32xf32> to vector<8xf32>
      %44 = vector.shape_cast %43 : vector<8xf32> to vector<8x1xf32>
      %c8 = arith.constant 8 : index
      %c0_31 = arith.constant 0 : index
      %45 = vector.load %arg15[%c8, %c0_31] : memref<24x32xf32, #tpu.memory_space<vmem>>, vector<8x32xf32>
      %46 = arith.mulf %45, %40 : vector<8x32xf32>
      %cst_32 = arith.constant dense<0.000000e+00> : vector<8xf32>
      %47 = vector.multi_reduction <add>, %46, %cst_32 [1] : vector<8x32xf32> to vector<8xf32>
      %48 = vector.shape_cast %47 : vector<8xf32> to vector<8x1xf32>
      %c0_33 = arith.constant 0 : index
      %c0_34 = arith.constant 0 : index
      %c0_35 = arith.constant 0 : index
      %49 = vector.load %arg5[%c0_33, %c0_34, %c0_35] : memref<1x8x32xf32, #tpu.memory_space<vmem>>, vector<1x8x32xf32>
      %50 = vector.shape_cast %49 : vector<1x8x32xf32> to vector<8x32xf32>
      %cst_36 = arith.constant dense<0.000000e+00> : vector<8x8xf32>
      %51 = tpu.matmul %40, %50, %cst_36 {dimension_numbers = #tpu.dot_dimension_numbers<[1], [1], [0], [0], [0, 0, 1, 0], [], []>} : vector<8x32xf32>, vector<8x32xf32>, vector<8x8xf32> -> vector<8x8xf32>
      %52 = vector.extract_strided_slice %38 {offsets = [0, 0], sizes = [8, 1], strides = [1, 1]} : vector<24x1xf32> to vector<8x1xf32>
      %53 = arith.subf %44, %52 : vector<8x1xf32>
      %54 = vector.extract_strided_slice %38 {offsets = [8, 0], sizes = [8, 1], strides = [1, 1]} : vector<24x1xf32> to vector<8x1xf32>
      %55 = arith.subf %48, %54 : vector<8x1xf32>
      %56 = vector.extract_strided_slice %38 {offsets = [16, 0], sizes = [8, 1], strides = [1, 1]} : vector<24x1xf32> to vector<8x1xf32>
      %cst_37 = arith.constant 7.812500e-03 : f32
      %57 = vector.broadcast %cst_37 : f32 to vector<8x128xf32>
      %58 = vector.shape_cast %56 : vector<8x1xf32> to vector<8x1xf32>
      %59 = vector.broadcast %58 : vector<8x1xf32> to vector<8x128xf32>
      %cst_38 = arith.constant dense<0.000000e+00> : vector<8x8xf32>
      %60 = tpu.matmul %57, %59, %cst_38 {dimension_numbers = #tpu.dot_dimension_numbers<[1], [1], [0], [0], [0, 0, 1, 0], [], []>} : vector<8x128xf32>, vector<8x128xf32>, vector<8x8xf32> -> vector<8x8xf32>
      %61 = vector.extract_strided_slice %34 {offsets = [0, 0], sizes = [8, 1], strides = [1, 1]} : vector<8x8xf32> to vector<8x1xf32>
      %62 = arith.addf %61, %53 : vector<8x1xf32>
      %63 = vector.extract_strided_slice %34 {offsets = [0, 1], sizes = [8, 1], strides = [1, 1]} : vector<8x8xf32> to vector<8x1xf32>
      %64 = arith.addf %63, %55 : vector<8x1xf32>
      %65 = vector.extract_strided_slice %34 {offsets = [0, 2], sizes = [8, 6], strides = [1, 1]} : vector<8x8xf32> to vector<8x6xf32>
      %66 = vector.extract_strided_slice %51 {offsets = [0, 0], sizes = [8, 6], strides = [1, 1]} : vector<8x8xf32> to vector<8x6xf32>
      %67 = arith.addf %65, %66 : vector<8x6xf32>
      %68 = vector.extract_strided_slice %60 {offsets = [0, 0], sizes = [8, 6], strides = [1, 1]} : vector<8x8xf32> to vector<8x6xf32>
      %69 = arith.subf %67, %68 : vector<8x6xf32>
      %70 = arith.maximumf %62, %64 : vector<8x1xf32>
      %cst_39 = arith.constant dense<0xFF800000> : vector<8xf32>
      %71 = vector.multi_reduction <maximumf>, %69, %cst_39 [1] : vector<8x6xf32> to vector<8xf32>
      %72 = vector.shape_cast %71 : vector<8xf32> to vector<8x1xf32>
      %73 = arith.maximumf %70, %72 : vector<8x1xf32>
      %74 = arith.subf %62, %73 : vector<8x1xf32>
      %75 = math.exp %74 : vector<8x1xf32>
      %76 = arith.subf %64, %73 : vector<8x1xf32>
      %77 = math.exp %76 : vector<8x1xf32>
      %78 = arith.addf %75, %77 : vector<8x1xf32>
      %79 = vector.broadcast %73 : vector<8x1xf32> to vector<8x6xf32>
      %80 = arith.subf %69, %79 : vector<8x6xf32>
      %81 = math.exp %80 : vector<8x6xf32>
      %cst_40 = arith.constant dense<0.000000e+00> : vector<8xf32>
      %82 = vector.multi_reduction <add>, %81, %cst_40 [1] : vector<8x6xf32> to vector<8xf32>
      %83 = vector.shape_cast %82 : vector<8xf32> to vector<8x1xf32>
      %84 = arith.addf %78, %83 : vector<8x1xf32>
      %85 = math.log %84 : vector<8x1xf32>
      %86 = arith.addf %73, %85 : vector<8x1xf32>
      %cst_41 = arith.constant dense<0.000000e+00> : vector<1xf32>
      %87 = vector.multi_reduction <add>, %86, %cst_41 [0] : vector<8x1xf32> to vector<1xf32>
      %88 = vector.shape_cast %87 : vector<1xf32> to vector<1x1xf32>
      %cst_42 = arith.constant 0.000000e+00 : f32
      %89 = vector.broadcast %cst_42 : f32 to vector<1x1x8x128xf32>
      %cst_43 = arith.constant 8.000000e+00 : f32
      %90 = vector.broadcast %cst_43 : f32 to vector<1x1xf32>
      %91 = arith.divf %88, %90 : vector<1x1xf32>
      %92 = vector.shape_cast %91 : vector<1x1xf32> to vector<1x1x1x1xf32>
      %93 = vector.broadcast %92 : vector<1x1x1x1xf32> to vector<1x1x8x128xf32>
      %94 = arith.subf %89, %93 : vector<1x1x8x128xf32>
      %c0_44 = arith.constant 0 : index
      %c0_45 = arith.constant 0 : index
      %c0_46 = arith.constant 0 : index
      %c0_47 = arith.constant 0 : index
      %95 = vector.load %arg14[%c0_44, %c0_45, %c0_46, %c0_47] : memref<1x1x8x128xf32, #tpu.memory_space<vmem>>, vector<1x1x8x128xf32>
      tpu.vector_store %arg14[%c0_44, %c0_45, %c0_46, %c0_47], %94 {strides = array<i32>} : memref<1x1x8x128xf32, #tpu.memory_space<vmem>>, vector<1x1x8x128xf32>,
    } else {
    }
    return
  }
  func.func @transform_0(%arg0: i32, %arg1: i32, %arg2: i32) -> (i32, i32, i32) {
    %c0_i32 = arith.constant 0 : i32
    %c0_i32_0 = arith.constant 0 : i32
    return %arg0, %arg1, %c0_i32 : i32, i32, i32
  }
  func.func @transform_1(%arg0: i32, %arg1: i32, %arg2: i32) -> (i32, i32, i32) {
    %c0_i32 = arith.constant 0 : i32
    %c0_i32_0 = arith.constant 0 : i32
    return %arg0, %arg1, %c0_i32 : i32, i32, i32
  }
  func.func @transform_2(%arg0: i32, %arg1: i32, %arg2: i32) -> (i32, i32, i32) {
    %c0_i32 = arith.constant 0 : i32
    %c0_i32_0 = arith.constant 0 : i32
    %c0_i32_1 = arith.constant 0 : i32
    return %arg0, %c0_i32, %c0_i32_0 : i32, i32, i32
  }
  func.func @transform_3(%arg0: i32, %arg1: i32, %arg2: i32) -> (i32, i32, i32) {
    %c0_i32 = arith.constant 0 : i32
    %c0_i32_0 = arith.constant 0 : i32
    return %arg0, %arg1, %c0_i32 : i32, i32, i32
  }
  func.func @transform_4(%arg0: i32, %arg1: i32, %arg2: i32) -> (i32, i32, i32) {
    %c0_i32 = arith.constant 0 : i32
    %c0_i32_0 = arith.constant 0 : i32
    %c0_i32_1 = arith.constant 0 : i32
    return %arg0, %c0_i32, %c0_i32_0 : i32, i32, i32
  }
  func.func @transform_5(%arg0: i32, %arg1: i32, %arg2: i32) -> (i32, i32) {
    %c0_i32 = arith.constant 0 : i32
    %c0_i32_0 = arith.constant 0 : i32
    %c0_i32_1 = arith.constant 0 : i32
    return %c0_i32, %c0_i32_0 : i32, i32
  }
  func.func @transform_6(%arg0: i32, %arg1: i32, %arg2: i32) -> (i32, i32) {
    %c0_i32 = arith.constant 0 : i32
    %c0_i32_0 = arith.constant 0 : i32
    %c0_i32_1 = arith.constant 0 : i32
    return %c0_i32, %c0_i32_0 : i32, i32
  }
  func.func @transform_7(%arg0: i32, %arg1: i32, %arg2: i32) -> (i32, i32) {
    %c0_i32 = arith.constant 0 : i32
    %c0_i32_0 = arith.constant 0 : i32
    %c0_i32_1 = arith.constant 0 : i32
    return %c0_i32, %c0_i32_0 : i32, i32
  }
  func.func @transform_8(%arg0: i32, %arg1: i32, %arg2: i32) -> (i32, i32) {
    %c0_i32 = arith.constant 0 : i32
    %c0_i32_0 = arith.constant 0 : i32
    %c0_i32_1 = arith.constant 0 : i32
    return %c0_i32, %c0_i32_0 : i32, i32
  }
  func.func @transform_9(%arg0: i32, %arg1: i32, %arg2: i32) -> (i32, i32) {
    %c0_i32 = arith.constant 0 : i32
    %c0_i32_0 = arith.constant 0 : i32
    %c0_i32_1 = arith.constant 0 : i32
    return %c0_i32, %c0_i32_0 : i32, i32
  }
  func.func @transform_10(%arg0: i32, %arg1: i32, %arg2: i32) -> (i32, i32) {
    %c0_i32 = arith.constant 0 : i32
    %c0_i32_0 = arith.constant 0 : i32
    return %c0_i32, %arg2 : i32, i32
  }
  func.func @transform_11(%arg0: i32, %arg1: i32, %arg2: i32) -> (i32, i32, i32, i32) {
    %c0_i32 = arith.constant 0 : i32
    %c0_i32_0 = arith.constant 0 : i32
    %c0_i32_1 = arith.constant 0 : i32
    return %arg0, %arg1, %c0_i32, %c0_i32_0 : i32, i32, i32, i32
  }
}

</mosaic_0001>

<bundles_post_ra>
// kernel: tpu_custom_call.1
= control target key start
LH: loop header
LB: loop body
LE: loop exit
PB: predicated region body
PF: predicated region fallthrough
CT: control target
= control target key end

     0   :  { %s2615_s0 = inlined_call_operand.hbm [shape: f32[2,8,32], index: 0, kind: input, shape index: {}]   ;;  %s2616_s1 = inlined_call_operand.hbm [shape: f32[2,8,32], index: 1, kind: input, shape index: {}]   ;;  %s2617_s2 = inlined_call_operand.hbm [shape: f32[2,8,32], index: 2, kind: input, shape index: {}]   ;;  %s2618_s3 = inlined_call_operand.hbm [shape: f32[2,8,32], index: 3, kind: input, shape index: {}]   ;;  %s2619_s4 = inlined_call_operand.hbm [shape: f32[2,8,32], index: 4, kind: input, shape index: {}]   ;;  %s2620_s5 = inlined_call_operand.vmem [shape: f32[8,32], index: 5, kind: input, shape index: {}]   ;;  %s2621_s6 = inlined_call_operand.vmem [shape: f32[1,8], index: 6, kind: input, shape index: {}]   ;;  %s2622_s7 = inlined_call_operand.hbm [shape: f32[32,32], index: 7, kind: input, shape index: {}]   ;;  %s2623_s8 = inlined_call_operand.hbm [shape: f32[32,32], index: 8, kind: input, shape index: {}]   ;;  %s2624_s9 = inlined_call_operand.vmem [shape: f32[1,32], index: 9, kind: input, shape index: {}]   ;;  %s2625_s10 = inlined_call_operand.hbm [shape: f32[32,128], index: 10, kind: input, shape index: {}]   ;;  %s2626_s11 = inlined_call_operand.hbm [shape: f32[2,1,8,128], index: 11, kind: output, shape index: {}]  }
   0x1   :  { %2645 = sst [smem:[#allocation35_spill]] %s2616_s1 }
   0x2   :  { %2646 = sst [smem:[#allocation36_spill]] %s2618_s3 }
   0x3   :  { %2647 = sst [smem:[#allocation37_spill]] %s2620_s5 }
   0x4   :  { %2648 = sst [smem:[#allocation38_spill]] %s2621_s6 }
   0x5   :  { %2649 = sst [smem:[#allocation39_spill]] %s2622_s7 }
   0x6   :  { %2650 = sst [smem:[#allocation40_spill]] %s2623_s8 }
   0x7   :  { %2651 = sst [smem:[#allocation41_spill]] %s2626_s11 }
   0x8   :  { %16 = vsyncpa [#allocation7], 0 }
   0x9   :  { %18 = vsyncpa [#allocation7 + $0x1], 0 }
   0xa   :  { %19 = vsyncpa [#allocation10], 0 }
   0xb   :  { %21 = vsyncpa [#allocation10 + $0x1], 0 }
   0xc   :  { %22 = vsyncpa [#allocation13], 0 }
   0xd   :  { %24 = vsyncpa [#allocation13 + $0x1], 0 }
   0xe   :  { %25 = vsyncpa [#allocation16], 0 }
   0xf   :  { %26 = vsyncpa [#allocation19], 0 }
  0x10   :  { %27 = vsyncpa [#allocation8], 0 }
  0x11   :  { %29 = vsyncpa [#allocation8 + $0x1], 0  ;;  %s2221_s17 = smov 0   ;;  %s2223_s18 = smov 0  }
  0x12   :  { %s2225_s19 = smov 0   ;;  %s2227_s20 = smov 0  }
  0x13   :  { %s2229_s21 = smov 0   ;;  %s2231_s22 = smov 0  }
  0x14 LB: > { %2652 = sst [smem:[#allocation27_spill]] %s2119_s17  ;;  %s2252_s23 = sadd.s32 4294967295, %s2139_s22   ;;  %s2139_s22 = sphi %s2231_s22, %s35_s22   ;;  %s2135_s21 = sphi %s2229_s21, %s2695_s21   ;;  %s2131_s20 = sphi %s2227_s20, %s2694_s20   ;;  %s2127_s19 = sphi %s2225_s19, %s2698_s19   ;;  %s2123_s18 = sphi %s2223_s18, %s2697_s18   ;;  %s2119_s17 = sphi %s2221_s17, %s2696_s17  }
  0x15   : > { %2653 = sst [smem:[#allocation28_spill]] %s2131_s20  ;;  %s1551_s24 = sadd.s32 4294967294, %s2139_s22  }
  0x16   : > { %2654 = sst [smem:[#allocation29_spill]] %s2135_s21  ;;  %p76_p0 = scmp.ne.s32.totalorder %s2123_s18, %s2119_s17 }
  0x17   : > { %2655 = sst [smem:[#allocation30_spill]] %s2139_s22  ;;  %p2641_p1 = scmp.eq.s32.totalorder %s2252_s23, 0 }
  0x18   : > { %p347_p3 = scmp.eq.s32.totalorder %s1551_s24, 1  ;;  %p1552_p5 = scmp.ge.s32.totalorder %s2139_s22, 1 }
  0x19   : > { %p2261_p4 = por %p2641_p1, %p76_p0  ;;  %p354_p7 = scmp.lt.s32.totalorder %s2139_s22, 3 }
  0x1a   : > { %p2266_p6 = por %p347_p3, %p76_p0  ;;  %s2141_s28 = smov [#allocation15]  }
  0x1b   : > { %s2656_s25 = scalar_select %p2261_p4, 1, 0 }
  0x1c   : > { %s2657_s26 = scalar_select %p2266_p6, 1, 0 }
  0x1d   : > { %p2271_p8 = pnand %p1552_p5, %p354_p7  ;;  %s372_s29 = sshll.u32 %s2141_s28, 4  ;;  %s373_s29 = int_to_ptr.vmem [resolvable:$true] %s372_s29 }
  0x1e   : > { %2658 = sst [smem:[#allocation31_spill]] %s2657_s26  ;;  %s54_s12 = sadd.s32 1, %s2135_s21 }
  0x1f   : > { %p1693_p9 = pneg %p2271_p8  ;;  %s1836_s13 = scalar_lea.vmem %s373_s29, 512 }
  0x20   : > { %p1837_p13 = scmp.ne.s32.totalorder %s373_s29, %s1836_s13  ;;  %p1844_p5 = scmp.lt.s32.totalorder %s373_s29, %s373_s29 }
  0x21   : > { %p2280_p11 = pnand %p1693_p9, %p2641_p1  ;;  %p1845_p7 = scmp.lt.s32.totalorder %s1836_s13, %s1836_s13 }
  0x23   : > { %p2642_p12 = pneg %p2280_p11  ;;  %p1846_p2 = por %p1845_p7, %p1844_p5 }
  0x25   : > { %p1839_p0 = pnand %p1837_p13, %p2642_p12 }
  0x27   : > { %p1840_p3 = pneg %p1839_p0 }
  0x29   : > { %p1847_p10 = pnand %p1846_p2, %p1840_p3 }
  0x2b   : > { %1850 = shalt.err (!%p1847_p10)
}
  0x2c   : > { %s2629_s14 = smov 128   ;;  %s2631_s15 = smov 8  }
  0x2d   : > { %s2661_s7 = sld [smem:[#allocation39_spill]]  ;;  %p56_p2 = scmp.ge.s32.totalorder %s54_s12, 2 }
  0x2e   : > { %s63_s28 = sadd.s32 1, %s2127_s19  ;;  %p70_p9 = scmp.ne.s32.totalorder %s2127_s19, %s2123_s18 }
  0x2f   : > { %p71_p10 = scmp.eq.s32.totalorder %s2139_s22, 0  ;;  %s2700_s12 = smov (%p56_p2, %s54_s12), 0 }
  0x30   : > { %2662 = sst [smem:[#allocation32_spill]] %s2700_s12  ;;  %p2663_p0 = scmp.eq.s32.totalorder %s2252_s23, 1 }
  0x31   : > { %p72_p13 = por %p71_p10, %p70_p9  ;;  %s58_s26 = ssub.s32 %s2135_s21, %s2700_s12 }
  0x32   : > { %p2306_p3 = por %p2663_p0, %p70_p9  ;;  %p1726_p5 = scmp.lt.s32.totalorder %s2139_s22, 2 }
  0x33   : > { %1696 = dma.hbm_to_vmem [thread:$0]  (!%p2280_p11), %s2661_s7, 512, %s373_s29, [#allocation16], %s2629_s14, %s2629_s14, %s2631_s15  }
  0x34   : > { %s2664_s13 = scalar_select %p2306_p3, 1, 0 }
  0x35   : > { %p61_p7 = scmp.eq.s32.totalorder %s58_s26, 0  ;;  %s2637_s17 = sand.u32 1, %s2127_s19  }
  0x36   : > { %2665 = sst [smem:[#allocation33_spill]] %s2664_s13  ;;  %s2316_s29 = sshll.u32 %s2637_s17, 3 }
  0x37   : > { %s2319_s16 = sshll.u32 %s2135_s21, 7  ;;  %p2324_p2 = pnand %p1726_p5, %p72_p13 }
  0x38   : > { %s2322_s24 = scalar_select %p61_p7, %s2127_s19, %s63_s28  }
  0x39   : > { %s436_s15 = sand.u32 1, %s2139_s22   ;;  %s2668_s1 = sld [smem:[#allocation35_spill]] }
  0x3a   : > { %2666 = sst [smem:[#allocation34_spill]] %s2322_s24  ;;  %s440_s11 = scalar_lea.vmem [#allocation9], %s2316_s29 }
  0x3b   : > { %s448_s13 = sshll.u32 %s440_s11, 4  ;;  %s2334_s17 = scalar_lea.sflag [#allocation10], %s436_s15  ;;  %s449_s13 = int_to_ptr.vmem [resolvable:$true] %s448_s13 }
  0x3c   : > { %p2338_p9 = pneg %p2324_p2  ;;  %s1864_s28 = scalar_lea.vmem %s449_s13, 128 }
  0x3d   : > { %p1865_p10 = scmp.ne.s32.totalorder %s449_s13, %s1864_s28  ;;  %s2144_s24 = smov [#allocation9]  }
  0x3e   : > { %s1869_s22 = sshll.u32 %s2144_s24, 4  ;;  %s1870_s22 = int_to_ptr.vmem [resolvable:$false] %s1869_s22 }
  0x3f   : > { %s446_s26 = scalar_lea.hbm %s2668_s1, %s2319_s16  ;;  %p1867_p13 = pnand %p1865_p10, %p2338_p9 }
  0x40   : > { %s1871_s7 = scalar_lea.vmem %s1870_s22, 256  ;;  %p1872_p5 = scmp.lt.s32.totalorder %s449_s13, %s1870_s22 }
  0x41   : > { %p1868_p0 = pneg %p1867_p13  ;;  %p1873_p7 = scmp.lt.s32.totalorder %s1871_s7, %s1864_s28 }
  0x43   : > { %p1874_p1 = por %p1873_p7, %p1872_p5 }
  0x45   : > { %p1875_p12 = pnand %p1874_p1, %p1868_p0 }
  0x47   : > { %1878 = shalt.err (!%p1875_p12)
}
  0x48   : > { %1709 = dma.hbm_to_vmem [thread:$0]  (!%p2324_p2), %s446_s26, 128, %s449_s13, %s2334_s17  }
  0x49   : > { %s2670_s3 = sld [smem:[#allocation36_spill]]  ;;  %s477_s20 = scalar_lea.vmem [#allocation12], %s2316_s29 }
  0x4a   : > { %s485_s24 = sshll.u32 %s477_s20, 4  ;;  %s2352_s6 = scalar_lea.sflag [#allocation13], %s436_s15  ;;  %s486_s24 = int_to_ptr.vmem [resolvable:$true] %s485_s24 }
  0x4b   : > { %s1892_s22 = scalar_lea.vmem %s486_s24, 128  ;;  %s2145_s28 = smov [#allocation12]  }
  0x4c   : > { %p1893_p10 = scmp.ne.s32.totalorder %s486_s24, %s1892_s22  ;;  %s1897_s7 = sshll.u32 %s2145_s28, 4  ;;  %s1898_s7 = int_to_ptr.vmem [resolvable:$false] %s1897_s7 }
  0x4d   : > { %s1899_s5 = scalar_lea.vmem %s1898_s7, 256  ;;  %p1900_p13 = scmp.lt.s32.totalorder %s486_s24, %s1898_s7 }
  0x4e   : > { %p1895_p1 = pnand %p1893_p10, %p2338_p9  ;;  %p1901_p0 = scmp.lt.s32.totalorder %s1899_s5, %s1892_s22 }
  0x4f   : > { %s483_s1 = scalar_lea.hbm %s2670_s3, %s2319_s16 }
  0x50   : > { %p1896_p12 = pneg %p1895_p1  ;;  %p1902_p5 = por %p1901_p0, %p1900_p13 }
  0x52   : > { %p1903_p7 = pnand %p1902_p5, %p1896_p12 }
  0x54   : > { %1906 = shalt.err (!%p1903_p7)
}
  0x55   : > { %1715 = dma.hbm_to_vmem [thread:$0]  (!%p2324_p2), %s483_s1, 128, %s486_s24, %s2352_s6  }
  0x56   : > { %s2146_s20 = smov [#allocation17]   ;;  %s2147_s13 = smov [#allocation18]  }
  0x57   : > { %s385_s15 = sshll.u32 %s2146_s20, 4  ;;  %s403_s26 = sshll.u32 %s2147_s13, 4  ;;  %s386_s15 = int_to_ptr.vmem [resolvable:$true] %s385_s15  ;;  %s404_s26 = int_to_ptr.vmem [resolvable:$true] %s403_s26 }
  0x58   : > { %s1918_s11 = scalar_lea.vmem %s386_s15, 512  ;;  %p2671_p1 = pneg %p2280_p11 }
  0x59   : > { %p1919_p10 = scmp.ne.s32.totalorder %s386_s15, %s1918_s11  ;;  %p1926_p4 = scmp.lt.s32.totalorder %s386_s15, %s386_s15 }
  0x5a   : > { %p1927_p13 = scmp.lt.s32.totalorder %s1918_s11, %s1918_s11 }
  0x5b   : > { %p1921_p6 = pnand %p1919_p10, %p2671_p1 }
  0x5c   : > { %p1928_p12 = por %p1927_p13, %p1926_p4 }
  0x5d   : > { %p1922_p3 = pneg %p1921_p6 }
  0x5f   : > { %p1929_p0 = pnand %p1928_p12, %p1922_p3 }
  0x61   : > { %1932 = shalt.err (!%p1929_p0)
}
  0x62   : > { %s2672_s5 = smov 8   ;;  %s2673_s1 = smov 128  }
  0x63   : > { %s2674_s8 = sld [smem:[#allocation40_spill]]  ;;  %s1944_s22 = scalar_lea.vmem %s404_s26, 512 }
  0x64   : > { %p1945_p5 = scmp.ne.s32.totalorder %s404_s26, %s1944_s22  ;;  %p2675_p6 = pmov %p2671_p1 }
  0x65   : > { %p1952_p4 = scmp.lt.s32.totalorder %s404_s26, %s404_s26  ;;  %p1953_p3 = scmp.lt.s32.totalorder %s1944_s22, %s1944_s22 }
  0x66   : > { %p1947_p7 = pnand %p1945_p5, %p2675_p6 }
  0x67   : > { %p1954_p1 = por %p1953_p3, %p1952_p4 }
  0x68   : > { %p1948_p10 = pneg %p1947_p7 }
  0x69   : > { %1699 = dma.hbm_to_vmem [thread:$0]  (!%p2280_p11), %s2674_s8, 512, %s386_s15, [#allocation16], %s2673_s1, %s2673_s1, %s2672_s5  }
  0x6a   : > { %p1955_p13 = pnand %p1954_p1, %p1948_p10 }
  0x6c   : > { %1958 = shalt.err (!%p1955_p13)
}
  0x6d   : > { %1702 = dma.hbm_to_vmem [thread:$0]  (!%p2280_p11), %s2625_s10, 512, %s404_s26, [#allocation19], %s2673_s1, %s2673_s1, %s2672_s5  }
  0x6e   : > { %s427_s13 = scalar_lea.hbm %s2615_s0, %s2319_s16  ;;  %s421_s11 = scalar_lea.vmem [#allocation6], %s2316_s29 }
  0x6f   : > { %s429_s12 = sshll.u32 %s421_s11, 4  ;;  %s464_s22 = scalar_lea.hbm %s2617_s2, %s2319_s16  ;;  %s430_s12 = int_to_ptr.vmem [resolvable:$true] %s429_s12 }
  0x70   : > { %s2676_s3 = sand.u32 1, %s2127_s19   ;;  %s1972_s28 = scalar_lea.vmem %s430_s12, 128 }
  0x71   : > { %s418_s8 = scalar_lea.sflag [#allocation7], %s2676_s3  ;;  %p1973_p12 = scmp.ne.s32.totalorder %s430_s12, %s1972_s28 }
  0x72   : > { %s2148_s7 = smov [#allocation6]  }
  0x73   : > { %p1975_p0 = pnand %p1973_p12, %p2338_p9  ;;  %s1977_s26 = sshll.u32 %s2148_s7, 4  ;;  %s1978_s26 = int_to_ptr.vmem [resolvable:$false] %s1977_s26 }
  0x74   : > { %s1979_s5 = scalar_lea.vmem %s1978_s26, 256  ;;  %p1980_p11 = scmp.lt.s32.totalorder %s430_s12, %s1978_s26 }
  0x75   : > { %p1976_p5 = pneg %p1975_p0  ;;  %p1981_p6 = scmp.lt.s32.totalorder %s1979_s5, %s1972_s28 }
  0x77   : > { %p1982_p7 = por %p1981_p6, %p1980_p11 }
  0x79   : > { %p1983_p10 = pnand %p1982_p7, %p1976_p5 }
  0x7b   : > { %1986 = shalt.err (!%p1983_p10)
}
  0x7c   : > { %1706 = dma.hbm_to_vmem [thread:$0]  (!%p2324_p2), %s427_s13, 128, %s430_s12, %s418_s8  }
  0x7d   : > { %s459_s3 = scalar_lea.vmem [#allocation11], %s2316_s29  ;;  %s501_s11 = scalar_lea.hbm %s2619_s4, %s2319_s16 }
  0x7e   : > { %s466_s1 = sshll.u32 %s459_s3, 4  ;;  %s2149_s24 = smov [#allocation11]   ;;  %s467_s1 = int_to_ptr.vmem [resolvable:$true] %s466_s1 }
  0x7f   : > { %s2000_s30 = scalar_lea.vmem %s467_s1, 128  ;;  %s2005_s28 = sshll.u32 %s2149_s24, 4  ;;  %s2006_s28 = int_to_ptr.vmem [resolvable:$false] %s2005_s28 }
  0x80   : > { %p2001_p4 = scmp.ne.s32.totalorder %s467_s1, %s2000_s30  ;;  %s2007_s7 = scalar_lea.vmem %s2006_s28, 256 }
  0x81   : > { %p2008_p13 = scmp.lt.s32.totalorder %s467_s1, %s2006_s28  ;;  %p2009_p12 = scmp.lt.s32.totalorder %s2007_s7, %s2000_s30 }
  0x82   : > { %p2003_p3 = pnand %p2001_p4, %p2338_p9 }
  0x83   : > { %p2010_p0 = por %p2009_p12, %p2008_p13 }
  0x84   : > { %p2004_p1 = pneg %p2003_p3 }
  0x86   : > { %p2011_p5 = pnand %p2010_p0, %p2004_p1 }
  0x88   : > { %2014 = shalt.err (!%p2011_p5)
}
  0x89   : > { %1712 = dma.hbm_to_vmem [thread:$0]  (!%p2324_p2), %s464_s22, 128, %s467_s1, %s2334_s17  }
  0x8a   : > { %s496_s12 = scalar_lea.vmem [#allocation14], %s2316_s29  ;;  %s2150_s3 = smov [#allocation14]  }
  0x8b   : > { %s503_s26 = sshll.u32 %s496_s12, 4  ;;  %s2033_s20 = sshll.u32 %s2150_s3, 4  ;;  %s504_s26 = int_to_ptr.vmem [resolvable:$true] %s503_s26  ;;  %s2034_s20 = int_to_ptr.vmem [resolvable:$false] %s2033_s20 }
  0x8c   : > { %s2028_s5 = scalar_lea.vmem %s504_s26, 128  ;;  %s2035_s15 = scalar_lea.vmem %s2034_s20, 256 }
  0x8d   : > { %p2029_p11 = scmp.ne.s32.totalorder %s504_s26, %s2028_s5  ;;  %p2036_p10 = scmp.lt.s32.totalorder %s504_s26, %s2034_s20 }
  0x8e   : > { %p2037_p4 = scmp.lt.s32.totalorder %s2035_s15, %s2028_s5 }
  0x8f   : > { %p2031_p6 = pnand %p2029_p11, %p2338_p9 }
  0x90   : > { %p2038_p3 = por %p2037_p4, %p2036_p10 }
  0x91   : > { %p2032_p7 = pneg %p2031_p6 }
  0x93   : > { %p2039_p1 = pnand %p2038_p3, %p2032_p7 }
  0x95   : > { %2042 = shalt.err (!%p2039_p1)
}
  0x96   : > { %1718 = dma.hbm_to_vmem [thread:$0]  (!%p2324_p2), %s501_s11, 128, %s504_s26, %s2352_s6  }
  0x97   : > { %512 = sbr.rel (%p2271_p8) target bundleno = 2325 (0x915), region = 64  ;;  %s2425_s21 = sand.u32 (!%p2271_p8), 1, %s2123_s18  }
  0x98   : > { %s2428_s22 = sshll.u32 (!%p2271_p8), %s2425_s21, 3  ;;  %s515_s14 = scalar_lea.sflag (!%p2271_p8), [#allocation7], %s2425_s21 }
  0x99   : > { %s518_s1 = scalar_lea.vmem (!%p2271_p8), [#allocation6], %s2428_s22  ;;  %p2677_p9 = scmp.ne.s32.totalorder (!%p2271_p8), %s2656_s25, 0 }
  0x9c   : > { %2094 = dma.done.wait (%p2677_p9), %s515_s14, 128  }
  0x9d   : > { %2096 = vsyncadd (%p2677_p9), %s515_s14, 4294967168  ;;  %s523_s6 = sand.u32 1, %s2252_s23   ;;  %s527_s16 = scalar_lea.vmem [#allocation9], %s2428_s22 }
  0x9e   : > { %s524_s27 = scalar_lea.sflag [#allocation10], %s523_s6 }
  0x9f   : > { %2098 = dma.done.wait (%p2677_p9), %s524_s27, 256  }
  0xa0   : > { %2100 = vsyncadd (%p2677_p9), %s524_s27, 4294967040  ;;  %s536_s11 = scalar_lea.vmem [#allocation11], %s2428_s22  ;;  %s542_s30 = scalar_lea.sflag [#allocation13], %s523_s6 }
  0xa1   : > { %s545_s24 = scalar_lea.vmem [#allocation12], %s2428_s22 }
  0xa2   : > { %2102 = dma.done.wait (%p2677_p9), %s542_s30, 256  }
  0xa3   : > { %2104 = vsyncadd (%p2677_p9), %s542_s30, 4294967040  ;;  %s554_s28 = scalar_lea.vmem [#allocation14], %s2428_s22  ;;  %p2678_p8 = scmp.eq.s32.totalorder %s2252_s23, 0 }
  0xa5   : > { %2106 = dma.done.wait (%p2678_p8), [#allocation16], 1024   ;;  %p2679_p2 = pmov %p2678_p8 }
  0xa7   : > { %2108 = vsyncadd (%p2679_p2), [#allocation16], 4294966272  ;;  %p2680_p13 = pmov %p2679_p2 }
  0xa8   : > { %p2681_p12 = pmov %p2679_p2 }
  0xa9   : > { %2110 = dma.done.wait (%p2680_p13), [#allocation19], 512  }
  0xaa   : > { %2112 = vsyncadd (%p2681_p12), [#allocation19], 4294966784  ;;  %v2151_v0 = vmov 0.0   ;;  %vm2152_vm0 = vmmov 0   ;;  %v633_v1 = vld [vmem:[#allocation17 + $0x18] sm:$0xff]  ;;  %v632_v2 = vld [vmem:[#allocation17 + $0x10] sm:$0xff]  ;;  %v997_v30 = vlaneseq }
  0xab   : > { %1615 = vmatprep.subr.mxu0 %v2151_v0  ;;  %1623 = vmatprep.mubr.msk.f32.mxu0 %vm2152_vm0, %v2151_v0  ;;  %v724_v3 = vld [vmem:[#allocation15 + $0x18] sm:$0xff]  ;;  %v631_v4 = vld [vmem:[#allocation17 + $0x8] sm:$0xff]  ;;  %v723_v5 = vld [vmem:[#allocation15 + $0x10] sm:$0xff]  ;;  %vm641_vm1 = vcmask 261120   ;;  %s2682_s13 = sld [smem:[#allocation37_spill]]  ;;  %vm893_vm2 = vcmask 7168  }
  0xac   : > { %1626 = vmatprep.subr.mxu1 %v2151_v0  ;;  %1634 = vmatprep.mubr.msk.f32.mxu1 %vm2152_vm0, %v2151_v0  ;;  %v722_v6 = vld [vmem:[#allocation15 + $0x8] sm:$0xff]  ;;  %v630_v7 = vld [vmem:[#allocation17] sm:$0xff]  ;;  %v629_v8 = vld [vmem:[%s518_s1] sm:$0xff]  ;;  %v2153_v29 = vmov -1e+30   ;;  %897 = vst.msk [vmem:[#allocation5] sm:$0xff] %vm893_vm2, %v2151_v0 }
  0xad   : > { %1616 = vmatpush3.msra.mxu0 %v633_v1  ;;  %1627 = vmatpush3.msra.mxu1 %v724_v3  ;;  %v721_v9 = vld [vmem:[#allocation15] sm:$0xff]  ;;  %v720_v10 = vld [vmem:[%s554_s28] sm:$0xff]  ;;  %v901_v13 = vld [vmem:[#allocation18 + $0x8] sm:$0xff]  ;;  %896 = vst.msk [vmem:[#allocation4 + $0x10] sm:$0xff] %vm893_vm2, %v2153_v29  ;;  %v998_v31 = vand.u32 127, %v997_v30  ;;  %v2154_v41 = vmov 0  }
  0xae   : > { %1617 = vmatprep.subr.mxu0 %v2151_v0  ;;  %1628 = vmatprep.subr.mxu1 %v2151_v0  ;;  %v903_v11 = vld [vmem:[#allocation18 + $0x18] sm:$0xff]  ;;  %v902_v12 = vld [vmem:[#allocation18 + $0x10] sm:$0xff]  ;;  %v716_v14 = vld [vmem:[%s527_s16] sm:$0xff]  ;;  %894 = vst.msk [vmem:[#allocation4] sm:$0xff] %vm893_vm2, %v2153_v29  ;;  %s2683_s5 = sld [smem:[#allocation38_spill]]  ;;  %vm879_vm4 = vcmask 64512  }
  0xaf   : > { %1618 = vmatpush3.msra.mxu0 %v632_v2  ;;  %1629 = vmatpush3.msra.mxu1 %v723_v5  ;;  %v900_v15 = vld [vmem:[#allocation18] sm:$0xff]  ;;  %717 = vst.msk [vmem:[#allocation2 + $0x8] sm:$0xff] %vm641_vm1, %v716_v14  ;;  %v718_v16 = vld [vmem:[%s536_s11] sm:$0xff]  ;;  %vm1002_vm3 = vcmp.lt.s32.totalorder %v998_v31, 64  ;;  %s2156_s3 = smov 2   ;;  %s2157_s20 = smov 1  }
  0xb0   : > { %1619 = vmatprep.subr.mxu0 %v2151_v0  ;;  %1630 = vmatprep.subr.mxu1 %v2151_v0  ;;  %719 = vst.msk [vmem:[#allocation2 + $0x10] sm:$0xff] %vm641_vm1, %v718_v16  ;;  %v1577_v17 = vld [vmem:[%s2624_s9] ss:$0 sm:$0xff]  ;;  %vm1278_vm5 = vcmask 64528   ;;  %s2158_s15 = smov 127   ;;  %s2159_s17 = smov 126  }
  0xb1   : > { %1620 = vmatpush3.msra.mxu0 %v631_v4  ;;  %1631 = vmatpush3.msra.mxu1 %v722_v6  ;;  %v725_v24 = vld [vmem:[%s2682_s13] sm:$0xff]  ;;  %895 = vst.msk [vmem:[#allocation4 + $0x8] sm:$0xff] %vm893_vm2, %v2153_v29  ;;  %898 = vst.msk [vmem:[#allocation5 + $0x8] sm:$0xff] %vm893_vm2, %v2151_v0  ;;  %vm1309_vm6 = vcmask 48128   ;;  %s2684_s29 = sld [smem:[#allocation28_spill]]  ;;  %s624_s6 = scalar_lea.vmem [#allocation20], %s2428_s22 }
  0xb2   : > { %1621 = vmatprep.subr.mxu0 %v2151_v0  ;;  %1632 = vmatprep.subr.mxu1 %v2151_v0  ;;  %v2519_v28 = vld [vmem:[%s545_s24] sm:$0xff]  ;;  %899 = vst.msk [vmem:[#allocation5 + $0x10] sm:$0xff] %vm893_vm2, %v2151_v0  ;;  %s2685_s14 = sld [smem:[#allocation33_spill]]  ;;  %s1348_s27 = sshll.u32 %s624_s6, 4  ;;  %s1349_s27 = int_to_ptr.vmem [resolvable:$true] %s1348_s27 }
  0xb3   : > { %1622 = vmatpush3.msra.mxu0 %v630_v7  ;;  %1633 = vmatpush3.msra.mxu1 %v721_v9  ;;  %s2686_s30 = sld [smem:[#allocation41_spill]]  ;;  %s1334_s28 = scalar_lea.sflag [#allocation8], %s2425_s21 }
  0xb4   : > { %1624 = vmatmul.mubr.msk.f32.vlgmr.msra.gmra.mxu0 %vm641_vm1, %v629_v8  ;;  %1637 = vmatprep.subr.mxu0 %v2151_v0  ;;  %v1014_v42 = vld [vmem:[#allocation4 + $0x10] sm:$0xff]  ;;  %s2043_s23 = scalar_lea.vmem %s1349_s27, 128  ;;  %s2160_s25 = smov [#allocation20]  }
  0xb5   : > { %1639 = vmatprep.mubr.msk.f32.mxu0 %vm2152_vm0, %v2151_v0  ;;  %1635 = vmatmul.mubr.msk.f32.vlgmr.msra.gmra.mxu1 %vm641_vm1, %v720_v10  ;;  %v2542_v4 = vld [vmem:[#allocation4] sm:$0xff]  ;;  %p2044_p0 = scmp.ne.s32.totalorder %s1349_s27, %s2043_s23  ;;  %s2047_s7 = sshll.u32 %s2160_s25, 4  ;;  %s2048_s7 = int_to_ptr.vmem [resolvable:$false] %s2047_s7 }
  0xb6   : > { %1642 = vmatprep.subr.mxu1 %v2151_v0  ;;  %1650 = vmatprep.mubr.msk.f32.mxu1 %vm2152_vm0, %v2151_v0  ;;  %v2500_v22 = vld [vmem:[#allocation2 + $0x8] sm:$0xff]  ;;  %s2049_s8 = scalar_lea.vmem %s2048_s7, 256  ;;  %p2050_p7 = scmp.lt.s32.totalorder %s1349_s27, %s2048_s7 }
  0xb7   : > { %1643 = vmatpush3.msra.mxu1 %v903_v11  ;;  %v906_v23 = vld [vmem:[#allocation2 + $0x10] sm:$0xff]  ;;  %1793 = vset.pattern.permute.xlu0 %v2154_v41  ;;  %s1589_s1 = sshll.u32 %s2684_s29, 7  ;;  %p2051_p10 = scmp.lt.s32.totalorder %s2049_s8, %s2043_s23 }
  0xb8   : > { %1644 = vmatprep.subr.mxu1 %v2151_v0  ;;  %1794 = vset.pattern.permute.xlu1 %v2154_v41  ;;  %v1013_v1 = vld [vmem:[#allocation4 + $0x8] sm:$0xff]  ;;  %p2687_p5 = scmp.ne.s32.totalorder %s2685_s14, 0 }
  0xb9   : > { %1645 = vmatpush3.msra.mxu1 %v902_v12  ;;  %v1020_v52 = vld [vmem:[#allocation5 + $0x10] sm:$0xff]  ;;  %s1346_s24 = scalar_lea.hbm %s2686_s30, %s1589_s1  ;;  %p2052_p4 = por %p2051_p10, %p2050_p7 }
  0xba   : > { %1646 = vmatprep.subr.mxu1 %v2151_v0  ;;  %p2045_p11 = pnand %p2044_p0, %p2687_p5 }
  0xbb   : > { %1647 = vmatpush3.msra.mxu1 %v901_v13 }
  0xbc   : > { %1648 = vmatprep.subr.mxu1 %v2151_v0  ;;  %p2046_p6 = pneg %p2045_p11 }
  0xbd   : > { %1649 = vmatpush3.msra.mxu1 %v900_v15 }
  0xbe   : > { %p2053_p3 = pnand %p2052_p4, %p2046_p6 }
 0x174   : > { %v711_v18 = vpop.f32.mrf.mxu0 }
 0x175   : > { %v712_v19 = vadd.f32 %v1577_v17, %v711_v18  ;;  %v795_v25 = vpop.f32.mrf.mxu1 }
 0x176   : > { %v1625_v20 = vpop.f32.mrf.mxu0  ;;  %v796_v26 = vadd.f32 %v795_v25, %v725_v24 }
 0x177   : > { %715 = vst.msk [vmem:[#allocation2] sm:$0xff] %vm641_vm1, %v712_v19  ;;  %v1636_v27 = vpop.f32.mrf.mxu1 }
 0x178   : > { %1638 = vmatpush3.xpose.msk.msra.mxu0 %vm641_vm1, %v796_v26 }
 0x179   : > { %1659 = vmatprep.subr.mxu0 %v2151_v0 }
 0x17b   : > { %1640 = vmatmul.mubr.msk.f32.vlgmr.msra.gmra.mxu0 %vm641_vm1, %v629_v8  ;;  %v1580_v8 = vld [vmem:[%s2683_s5] ss:$0 sm:$0xff] }
 0x17c   : > { %1660 = vmatpush3.xpose.msk.msra.mxu0 %vm641_vm1, %v718_v16  ;;  %1661 = vmatprep.mubr.msk.f32.mxu0 %vm2152_vm0, %v2151_v0  ;;  %v1099_v16 = vmul.f32 %v2519_v28, %v2500_v22 }
 0x17d   : > { %1664 = vmatprep.subr.mxu0 %v2151_v0 }
 0x17e   : > { %v2494_v21 = vld [vmem:[#allocation2] sm:$0xff]  ;;  %v1100_v18 = vsel %vm641_vm1, %v1099_v16, 0.0 }
 0x17f   : > { %1651 = vmatmul.mubr.msk.f32.vlgmr.msra.gmra.mxu1 %vm641_vm1, %v2494_v21  ;;  %1662 = vmatmul.mubr.msk.f32.vlgmr.msra.gmra.mxu0 %vm641_vm1, %v2519_v28 }
 0x180   : > { %1653 = vmatprep.mubr.msk.f32.mxu1 %vm2152_vm0, %v2151_v0  ;;  %1666 = vmatprep.mubr.msk.f32.mxu0 %vm2152_vm0, %v2151_v0 }
 0x183   : > { %1654 = vmatmul.mubr.msk.f32.gmra.mxu1 %vm641_vm1, %v2500_v22  ;;  %v1094_v22 = vmul.f32 %v2519_v28, %v2494_v21 }
 0x184   : > { %1656 = vmatprep.mubr.msk.f32.mxu1 %vm2152_vm0, %v2151_v0  ;;  %v2155_v0 = vmov 0.0078125  }
 0x185   : > { %v1095_v29 = vsel %vm641_vm1, %v1094_v22, 0.0 }
 0x187   : > { %1657 = vmatmul.mubr.msk.f32.gmra.mxu1 %vm641_vm1, %v906_v23 }
 0x23b   : > { %v875_v61 = vpop.f32.mrf.mxu0 }
 0x23c   : > { %v876_v9 = vadd.f32 %v1580_v8, %v875_v61 }
 0x23d   : > { %v1641_v62 = vpop.f32.mrf.mxu0 }
 0x23e   : > { %v880_v10 = vsel %vm879_vm4, %v876_v9, -inf }
 0x23f   : > { %v983_v32 = vpop.f32.mrf.mxu1  ;;  %v1176_v11 = vpop.f32.mrf.mxu0 }
 0x240   : > { %v2534_v33 = vsel %vm1002_vm3, %v983_v32, -1e+30  ;;  %v1019_v32 = vld [vmem:[#allocation5 + $0x8] sm:$0xff] }
 0x241   : > { %v1652_v34 = vpop.f32.mrf.mxu1  ;;  %v1663_v12 = vpop.f32.mrf.mxu0 }
 0x243   : > { %v988_v35 = vpop.f32.mrf.mxu1 }
 0x244   : > { %v2536_v36 = vsel %vm1002_vm3, %v988_v35, -1e+30 }
 0x245   : > { %v1655_v37 = vpop.f32.mrf.mxu1 }
 0x247   : > { %v993_v38 = vpop.f32.mrf.mxu1 }
 0x248   : > { %v1005_v39 = vsel %vm1002_vm3, %v993_v38, -1e+30 }
 0x249   : > { %1010 = vmax.xlane.f32.xlu0 %v1005_v39  ;;  %v1658_v40 = vpop.f32.mrf.mxu1 }
 0x2d2   : > { %v1011_v43 = vpop.xlane.xlu0 %1010 }
 0x2d3   : > { %v1017_v44 = vmax.f32 %v1014_v42, %v1011_v43 }
 0x2d5   : > { %v1023_v45 = vsub.f32 %v1014_v42, %v1017_v44  ;;  %1072 = vst.msk [vmem:[#allocation4 + $0x10] sm:$0xff] %vm893_vm2, %v1017_v44  ;;  %1045 = vperm.xlu0 %1793, %v1017_v44  }
 0x2d7   : > { %v1028_v50 = vmul.f32 1.442695, %v1023_v45 }
 0x2dc   : > { %v1079_v59 = vld [vmem:[#allocation4 + $0x10] sm:$0xff] }
 0x350   : > { %v1046_v46 = vpop.permute.xlu0 %1045 }
 0x351   : > { %v1050_v47 = vsub.f32 %v1005_v39, %v1046_v46 }
 0x353   : > { %v1055_v48 = vmul.f32 1.442695, %v1050_v47 }
 0x355   : > { %1795 = vpow2.f32 %v1055_v48 }
 0x356   : > { %1797 = vpow2.f32 %v1028_v50 }
 0x362   : > { %v1796_v49 = vpop.eup %1795 }
 0x363   : > { %1061 = vadd.xlane.f32.xlu1 %v1796_v49  ;;  %v1798_v51 = vpop.eup %1797 }
 0x364   : > { %v1032_v53 = vmul.f32 %v1798_v51, %v1020_v52 }
 0x3ec   : > { %v1062_v54 = vpop.xlane.xlu1 %1061 }
 0x3ed   : > { %v1065_v55 = vadd.f32 %v1062_v54, %v1032_v53 }
 0x3ef   : > { %1069 = vst.msk [vmem:[#allocation5 + $0x10] sm:$0xff] %vm893_vm2, %v1065_v55 }
 0x3f6   : > { %v1082_v56 = vld [vmem:[#allocation5 + $0x10] sm:$0xff] }
 0x3f7   : > { %1799 = vlog2.f32 %v1082_v56 }
 0x404   : > { %v1800_v57 = vpop.eup %1799 }
 0x405   : > { %v1088_v58 = vmul.f32 0.6931472, %v1800_v57 }
 0x407   : > { %v1091_v60 = vadd.f32 %v1088_v58, %v1079_v59 }
 0x409   : > { %1184 = vperm.xlu1 %1794, %v1091_v60   ;;  %v1018_v60 = vld [vmem:[#allocation5] sm:$0xff] }
 0x42d   : > { %1008 = vmax.xlane.f32.xlu1 %v2536_v36 }
 0x431   : > { %1006 = vmax.xlane.f32.xlu1 %v2534_v33 }
 0x484   : > { %v1185_v63 = vpop.permute.xlu1 %1184 }
 0x485   : > { %1665 = vmatpush3.xpose.msra.mxu0 %v1185_v63 }
 0x488   : > { %1667 = vmatmul.mubr.f32.vlgmr.msra.gmra.mxu0 %v2155_v0 }
 0x4b6   : > { %v1009_v2 = vpop.xlane.xlu1 %1008 }
 0x4b7   : > { %v1016_v3 = vmax.f32 %v1013_v1, %v1009_v2 }
 0x4b9   : > { %v1022_v5 = vsub.f32 %v1013_v1, %v1016_v3  ;;  %1071 = vst.msk [vmem:[#allocation4 + $0x8] sm:$0xff] %vm893_vm2, %v1016_v3  ;;  %1040 = vperm.xlu0 %1793, %v1016_v3  }
 0x4ba   : > { %v1007_v6 = vpop.xlane.xlu1 %1006 }
 0x4bb   : > { %v2546_v7 = vmax.f32 %v2542_v4, %v1007_v6  ;;  %v1026_v30 = vmul.f32 1.442695, %v1022_v5 }
 0x4bd   : > { %1070 = vst.msk [vmem:[#allocation4] sm:$0xff] %vm893_vm2, %v2546_v7  ;;  %v1021_v57 = vsub.f32 %v2542_v4, %v2546_v7 }
 0x4bf   : > { %v1024_v58 = vmul.f32 1.442695, %v1021_v57 }
 0x4c0   : > { %v1078_v40 = vld [vmem:[#allocation4 + $0x8] sm:$0xff] }
 0x4c4   : > { %v1077_v3 = vld [vmem:[#allocation4] sm:$0xff] }
 0x4d8   : > { %881 = vmax.xlane.f32.xlu0 %v880_v10 }
 0x534   : > { %v1041_v13 = vpop.permute.xlu0 %1040 }
 0x535   : > { %v1049_v14 = vsub.f32 %v2536_v36, %v1041_v13 }
 0x537   : > { %v1053_v15 = vmul.f32 1.442695, %v1049_v14 }
 0x539   : > { %1801 = vpow2.f32 %v1053_v15 }
 0x546   : > { %v1802_v17 = vpop.eup %1801 }
 0x547   : > { %1059 = vadd.xlane.f32.xlu1 %v1802_v17 }
 0x548   : > { %v1253_v19 = vpop.f32.mrf.mxu0 }
 0x54a   : > { %v1668_v20 = vpop.f32.mrf.mxu0 }
 0x54b   : > { %1101 = vadd.xlane.f32.xlu1 %v1100_v18 }
 0x55c   : > { %1035 = vperm.xlu1 %1794, %v2546_v7  }
 0x560   : > { %1264 = vrot.lane.b32.xlu1 %v1176_v11, %s2156_s3 }
 0x561   : > { %v882_v23 = vpop.xlane.xlu0 %881 }
 0x562   : > { %v883_v24 = vsub.f32 %v876_v9, %v882_v23 }
 0x564   : > { %v884_v25 = vmul.f32 1.442695, %v883_v24 }
 0x566   : > { %1803 = vpow2.f32 %v884_v25 }
 0x567   : > { %1805 = vpow2.f32 %v1026_v30 }
 0x573   : > { %v1804_v26 = vpop.eup %1803 }
 0x574   : > { %v886_v27 = vsel %vm879_vm4, %v1804_v26, 0.0  ;;  %v1806_v31 = vpop.eup %1805 }
 0x575   : > { %887 = vadd.xlane.f32.xlu0 %v886_v27  ;;  %v1031_v34 = vmul.f32 %v1806_v31, %v1019_v32 }
 0x58b   : > { %1269 = vrot.lane.b32.xlu0 %v1253_v19, %s2156_s3 }
 0x5aa   : > { %1096 = vadd.xlane.f32.xlu0 %v1095_v29 }
 0x5d0   : > { %v1060_v35 = vpop.xlane.xlu1 %1059 }
 0x5d1   : > { %v1064_v36 = vadd.f32 %v1060_v35, %v1031_v34 }
 0x5d3   : > { %1068 = vst.msk [vmem:[#allocation5 + $0x8] sm:$0xff] %vm893_vm2, %v1064_v36 }
 0x5d4   : > { %v1102_v42 = vpop.xlane.xlu1 %1101 }
 0x5d8   : > { %v1036_v28 = vpop.permute.xlu1 %1035 }
 0x5d9   : > { %v1048_v43 = vsub.f32 %v2534_v33, %v1036_v28 }
 0x5da   : > { %v1081_v37 = vld [vmem:[#allocation5 + $0x8] sm:$0xff] }
 0x5db   : > { %1807 = vlog2.f32 %v1081_v37  ;;  %v1051_v45 = vmul.f32 1.442695, %v1048_v43 }
 0x5dc   : > { %v1265_v50 = vpop.permute.xlu1 %1264 }
 0x5e8   : > { %v1808_v38 = vpop.eup %1807 }
 0x5e9   : > { %v1086_v39 = vmul.f32 0.6931472, %v1808_v38 }
 0x5eb   : > { %v1090_v41 = vadd.f32 %v1086_v39, %v1078_v40 }
 0x5ed   : > { %v1181_v21 = vsub.f32 %v1102_v42, %v1090_v41 }
 0x5ef   : > { %1259 = vrot.lane.b32.xlu1 %v1181_v21, %s2157_s20 }
 0x5fe   : > { %v888_v44 = vpop.xlane.xlu0 %887 }
 0x5ff   : > { %1809 = vlog2.f32 %v888_v44 }
 0x600   : > { %1811 = vpow2.f32 %v1051_v45 }
 0x601   : > { %1813 = vpow2.f32 %v1024_v58 }
 0x602   : > { %v1270_v52 = vpop.permute.xlu0 %1269 }
 0x60c   : > { %v1810_v46 = vpop.eup %1809 }
 0x60d   : > { %v890_v47 = vmul.f32 0.6931472, %v1810_v46  ;;  %v1812_v49 = vpop.eup %1811 }
 0x60e   : > { %v1814_v59 = vpop.eup %1813 }
 0x60f   : > { %v891_v48 = vsub.f32 %v883_v24, %v890_v47  ;;  %v1030_v61 = vmul.f32 %v1814_v59, %v1018_v60 }
 0x611   : > { %892 = vst.msk [vmem:[#allocation3] sm:$0xff] %vm879_vm4, %v891_v48 }
 0x613   : > { %1057 = vadd.xlane.f32.xlu1 %v1812_v49 }
 0x618   : > { %v1076_v51 = vld [vmem:[#allocation3] sm:$0xff] }
 0x619   : > { %v1267_v53 = vadd.f32 %v1265_v50, %v1076_v51 }
 0x61b   : > { %v1272_v54 = vsub.f32 %v1267_v53, %v1270_v52 }
 0x61d   : > { %v1279_v55 = vsel %vm1278_vm5, %v1272_v54, -inf }
 0x61e   : > { %1280 = vmax.xlane.f32.xlu1 %v1279_v55 }
 0x633   : > { %v1097_v6 = vpop.xlane.xlu0 %1096 }
 0x661   : > { %v1260_v33 = vpop.permute.xlu1 %1259 }
 0x662   : > { %v1262_v56 = vadd.f32 %v1260_v33, %v1076_v51 }
 0x664   : > { %1274 = vrot.lane.b32.xlu1 %v1262_v56, %s2158_s15 }
 0x69c   : > { %v1058_v62 = vpop.xlane.xlu1 %1057 }
 0x69d   : > { %v1063_v63 = vadd.f32 %v1058_v62, %v1030_v61 }
 0x69f   : > { %1067 = vst.msk [vmem:[#allocation5] sm:$0xff] %vm893_vm2, %v1063_v63 }
 0x6a6   : > { %v1080_v0 = vld [vmem:[#allocation5] sm:$0xff] }
 0x6a7   : > { %1815 = vlog2.f32 %v1080_v0  ;;  %v1281_v9 = vpop.xlane.xlu1 %1280 }
 0x6b4   : > { %v1816_v1 = vpop.eup %1815 }
 0x6b5   : > { %v1084_v2 = vmul.f32 0.6931472, %v1816_v1 }
 0x6b7   : > { %v1089_v5 = vadd.f32 %v1084_v2, %v1077_v3 }
 0x6b9   : > { %v1180_v8 = vsub.f32 %v1097_v6, %v1089_v5 }
 0x6bb   : > { %v1257_v10 = vadd.f32 %v1180_v8, %v1076_v51 }
 0x6d6   : > { %v1275_v4 = vpop.permute.xlu1 %1274 }
 0x6d7   : > { %v1277_v7 = vmax.f32 %v1257_v10, %v1275_v4 }
 0x6d9   : > { %v1282_v11 = vmax.f32 %v1277_v7, %v1281_v9 }
 0x6db   : > { %1287 = vrot.lane.b32.xlu1 %v1282_v11, %s2157_s20  ;;  %1299 = vperm.xlu0 %1793, %v1282_v11   ;;  %v1283_v24 = vsub.f32 %v1257_v10, %v1282_v11 }
 0x6dd   : > { %v1284_v25 = vmul.f32 1.442695, %v1283_v24 }
 0x74d   : > { %v1288_v12 = vpop.permute.xlu1 %1287 }
 0x74e   : > { %v1290_v13 = vsub.f32 %v1262_v56, %v1288_v12 }
 0x750   : > { %v1291_v14 = vmul.f32 1.442695, %v1290_v13 }
 0x752   : > { %1817 = vpow2.f32 %v1291_v14 }
 0x756   : > { %v1300_v15 = vpop.permute.xlu0 %1299 }
 0x757   : > { %v1302_v16 = vsub.f32 %v1272_v54, %v1300_v15 }
 0x759   : > { %v1303_v17 = vmul.f32 1.442695, %v1302_v16 }
 0x75b   : > { %1819 = vpow2.f32 %v1303_v17 }
 0x75c   : > { %1821 = vpow2.f32 %v1284_v25 }
 0x75f   : > { %v1818_v18 = vpop.eup %1817 }
 0x760   : > { %1294 = vrot.lane.b32.xlu0 %v1818_v18, %s2158_s15 }
 0x768   : > { %v1820_v19 = vpop.eup %1819 }
 0x769   : > { %1306 = vrot.lane.b32.xlu1 %v1820_v19, %s2159_s17  ;;  %v1822_v27 = vpop.eup %1821 }
 0x7d2   : > { %v1295_v26 = vpop.permute.xlu0 %1294 }
 0x7d3   : > { %v1297_v22 = vadd.f32 %v1822_v27, %v1295_v26 }
 0x7db   : > { %v1307_v20 = vpop.permute.xlu1 %1306 }
 0x7dc   : > { %v1310_v23 = vsel %vm1309_vm6, %v1307_v20, 0.0 }
 0x7dd   : > { %1311 = vadd.xlane.f32.xlu1 %v1310_v23 }
 0x866   : > { %v1312_v29 = vpop.xlane.xlu1 %1311 }
 0x867   : > { %v1313_v30 = vadd.f32 %v1312_v29, %v1297_v22 }
 0x869   : > { %1823 = vlog2.f32 %v1313_v30 }
 0x876   : > { %v1824_v31 = vpop.eup %1823 }
 0x877   : > { %v1315_v32 = vmul.f32 0.6931472, %v1824_v31 }
 0x879   : > { %v1316_v34 = vadd.f32 %v1315_v32, %v1282_v11 }
 0x87b   : > { %v1317_v35 = vsel %vm893_vm2, %v1316_v34, 0.0 }
 0x87c   : > { %v1318_v36 = vrot.slane %v1317_v35, 4 }
 0x87e   : > { %v1319_v37 = vadd.f32 %v1318_v36, %v1317_v35 }
 0x880   : > { %v1320_v38 = vrot.slane %v1319_v37, 2 }
 0x882   : > { %v1321_v39 = vadd.f32 %v1320_v38, %v1319_v37 }
 0x884   : > { %v1322_v40 = vrot.slane %v1321_v39, 1 }
 0x886   : > { %v1323_v41 = vadd.f32 %v1322_v40, %v1321_v39 }
 0x888   : > { %v1325_v42 = vmul.f32 0.125, %v1323_v41 }
 0x88a   : > { %1328 = vperm.xlu0 %1793, %v1325_v42  }
 0x905   : > { %v1329_v21 = vpop.permute.xlu0 %1328 }
 0x906   : > { %v1331_v28 = vsub.f32 0.0, %v1329_v21 }
 0x908   : > { %1332 = vst [vmem:[%s624_s6] sm:$0xff] %v1331_v28 }
 0x909   : > { %2056 = shalt.err (!%p2053_p3)
}
 0x90a   : > { %s2057_s22 = scalar_lea.hbm %s1346_s24, 128  ;;  %s2061_s12 = scalar_lea.hbm %s2686_s30, 256 }
 0x90b   : > { %p2058_p1 = scmp.ne.s32.totalorder %s1346_s24, %s2057_s22  ;;  %p2062_p2 = scmp.lt.s32.totalorder %s1346_s24, %s2686_s30 }
 0x90c   : > { %p2063_p13 = scmp.lt.s32.totalorder %s2061_s12, %s2057_s22 }
 0x90d   : > { %p2059_p9 = pnand %p2058_p1, %p2687_p5 }
 0x90e   : > { %p2064_p12 = por %p2063_p13, %p2062_p2 }
 0x90f   : > { %p2060_p8 = pneg %p2059_p9 }
 0x911   : > { %p2065_p0 = pnand %p2064_p12, %p2060_p8 }
 0x913   : > { %2068 = shalt.err (!%p2065_p0)
}
 0x914   : > { %1691 = dma.vmem_to_hbm [thread:$0]  (%p2687_p5), %s1349_s27, 128, %s1346_s24, %s1334_s28  }
 0x915 PF: > { %s2688_s3 = sld [smem:[#allocation27_spill]] }
 0x916   : > { %s2689_s20 = sld [smem:[#allocation31_spill]] }
 0x917   : > { %s2690_s15 = sld [smem:[#allocation30_spill]] }
 0x91b   : > { %s1360_s17 = sand.u32 1, %s2688_s3  }
 0x91c   : > { %p2691_p11 = scmp.ne.s32.totalorder %s2689_s20, 0  ;;  %s1361_s29 = scalar_lea.sflag [#allocation8], %s1360_s17 }
 0x91d   : > { %p2692_p6 = scmp.ge.s32.totalorder %s2690_s15, 2 }
 0x91f   : > { %p1720_p7 = pnand %p2692_p6, %p2691_p11 }
 0x921   : > { %p1721_p10 = pneg %p1720_p7 }
 0x923   : > { %2114 = dma.done.wait (%p1721_p10), %s1361_s29, 128  }
 0x924   : > { %2116 = vsyncadd (%p1721_p10), %s1361_s29, 4294967168  ;;  %s35_s22 = sadd.s32 1, %s2690_s15   ;;  %s2693_s1 = sld [smem:[#allocation34_spill]] }
 0x925   : > { %p32_p4 = scmp.ge.s32.totalorder %s35_s22, 4   ;;  %s2694_s20 = sld [smem:[#allocation29_spill]] }
 0x926   : > { %s2695_s21 = sld [smem:[#allocation32_spill]]  ;;  %s2696_s17 = smov %s2123_s18 }
 0x927   : > { %s2697_s18 = smov %s2127_s19  ;;  %34 = sbr.rel (!%p32_p4) target bundleno = 20 (0x14), region = 178 }
 0x92a   : > { %s2698_s19 = smov %s2693_s1 }
 0x92c   :  { %1366 = vsyncpa [#allocation7], 1 }
 0x92d   :  { %1368 = vsyncpa [#allocation7 + $0x1], 1 }
 0x92e   :  { %1369 = vsyncpa [#allocation10], 1 }
 0x92f   :  { %1371 = vsyncpa [#allocation10 + $0x1], 1 }
 0x930   :  { %1372 = vsyncpa [#allocation13], 1 }
 0x931   :  { %1374 = vsyncpa [#allocation13 + $0x1], 1 }
 0x932   :  { %1375 = vsyncpa [#allocation16], 1 }
 0x933   :  { %1376 = vsyncpa [#allocation19], 1 }
 0x934   :  { %1377 = vsyncpa [#allocation8], 1 }
 0x935   :  { %1379 = vsyncpa [#allocation8 + $0x1], 1 }

</bundles_post_ra>
